<compile_context>
chip_gen: v7x
topology: tpu7x:2x2x1
jax: 0.10.0
libtpu: 0.0.40
codegen_flags: <defaults>
</compile_context>

<pallas_src>
import functools

import jax
import jax.numpy as jnp
import numpy as np
from jax.experimental import pallas as pl
from jax.experimental.pallas import tpu as pltpu


def _boundary_masks(H, W, k):
    """(2k, H*W) f32 0/1 masks. Rows [0,k): horizontal validity for dx,
    rows [k,2k): vertical validity for dy (zero-padding of the conv)."""
    pad = (k - 1) // 2
    hh = np.repeat(np.arange(H), W)          # h coordinate of each flat position
    ww = np.tile(np.arange(W), H)            # w coordinate of each flat position
    rows = []
    for dx in range(k):
        ox = dx - pad
        rows.append(((ww + ox >= 0) & (ww + ox < W)).astype(np.float32))
    for dy in range(k):
        oy = dy - pad
        rows.append(((hh + oy >= 0) & (hh + oy < H)).astype(np.float32))
    return np.stack(rows)                    # (2k, H*W)


def _sam_kernel(w_ref, x_ref, m_ref, o_ref, *, k, W):
    """One grid step = TB batch elements in the flat (TB, C, H*W) layout.

    w_ref : SMEM (2*k*k,) f32    conv weights; channel 0 = max map, channel 1 = avg map
    x_ref : VMEM (TB, C, H*W)    input block (native dtype)
    m_ref : VMEM (2*k, H*W) f32  0/1 boundary masks (see _boundary_masks)
    o_ref : VMEM (TB, C, H*W)    output block
    """
    pad = (k - 1) // 2
    _, _, HW = x_ref.shape

    x = x_ref[...]                                       # bulk data, native dtype

    # Channel-wise reductions (torch.mean / torch.max over dim=1); tiny f32 maps.
    avg_x = jnp.mean(x, axis=1, dtype=jnp.float32)       # (TB, HW)
    max_x = jnp.max(x, axis=1).astype(jnp.float32)       # (TB, HW)

    def shifted(arr, off, mask_row):
        # arr[b, h*W + w] -> arr[b, h*W + w + off], zeroed outside the image.
        if off % HW != 0:
            arr = pltpu.roll(arr, shift=(-off) % HW, axis=1)
        return arr * m_ref[mask_row:mask_row + 1, :]

    # Hoisted horizontal shifts: k lane rolls per reduced map (2k rolls, XLU slot).
    max_sh = [shifted(max_x, dx - pad, dx) for dx in range(k)]
    avg_sh = [shifted(avg_x, dx - pad, dx) for dx in range(k)]

    # k x k conv, 2 in-channels -> 1 out-channel, kept on the VPU (the MXU would
    # be <1% utilized for a 2*k*k-tap, single-output-channel conv).
    acc = jnp.zeros_like(avg_x)
    for dy in range(k):
        row_m = jnp.zeros_like(avg_x)                    # independent accumulator chains
        row_a = jnp.zeros_like(avg_x)
        for dx in range(k):
            row_m = row_m + w_ref[0 * k * k + dy * k + dx] * max_sh[dx]
            row_a = row_a + w_ref[1 * k * k + dy * k + dx] * avg_sh[dx]
        # One vertical roll of the dx-weighted row sum per dy.
        acc = acc + shifted(row_m + row_a, (dy - pad) * W, k + dy)

    # Sigmoid gate on the tiny (TB, HW) map (kept exact; switch the divide to
    # pl.reciprocal(..., approx=True) if a few-ulp-looser gate is acceptable).
    v = 1.0 / (1.0 + jnp.exp(-acc))                      # (TB, HW) f32

    # Broadcast over channels; lane-dense store in the native dtype.
    o_ref[...] = (x * v[:, None, :].astype(x.dtype)).astype(o_ref.dtype)


def _choose_batch_tile(B, per_batch_bytes):
    """Largest batch tile that (a) divides B, (b) keeps the double-buffered
    in+out footprint <= ~8 MiB, and (c) leaves >= 2 grid steps when B >= 2 so
    the 'parallel' axis can shard across both TensorCores on v7x."""
    budget = 8 * 1024 * 1024
    max_tb = B // 2 if B >= 2 else 1
    tb = 1
    for cand in range(1, max_tb + 1):
        if B % cand == 0 and 4 * cand * per_batch_bytes <= budget:
            tb = cand
    return tb


def spatial_attention(x, weight, k):
    """x: (B, C, H, W); weight: (1, 2, k, k) OIHW (no bias); k in {3, 5, 7}."""
    assert k in (3, 5, 7)
    B, C, H, W = x.shape
    HW = H * W

    # Lane-dense layout for the bulk load / gate / store path.
    x_flat = x.reshape(B, C, HW)
    w_flat = weight.reshape(-1).astype(jnp.float32)          # (2*k*k,) -> SMEM scalars
    masks = jnp.asarray(_boundary_masks(H, W, k))            # (2*k, HW) f32

    TB = _choose_batch_tile(B, C * HW * x.dtype.itemsize)

    grid_spec = pltpu.PrefetchScalarGridSpec(
        num_scalar_prefetch=1,                               # conv weights live in SMEM
        grid=(B // TB,),
        in_specs=[
            pl.BlockSpec((TB, C, HW), lambda b, w: (b, 0, 0)),
            pl.BlockSpec((2 * k, HW), lambda b, w: (0, 0)),
        ],
        out_specs=pl.BlockSpec((TB, C, HW), lambda b, w: (b, 0, 0)),
    )

    out_flat = pl.pallas_call(
        functools.partial(_sam_kernel, k=k, W=W),
        out_shape=jax.ShapeDtypeStruct((B, C, HW), x.dtype),
        grid_spec=grid_spec,
        compiler_params=pltpu.CompilerParams(
            dimension_semantics=("parallel",),
            vmem_limit_bytes=48 * 1024 * 1024,               # headroom over default scoped limits
        ),
    )(w_flat, x_flat, masks)

    # TODO(synk): for production CBAM shapes where one (TB, C, H*W) block would
    # overrun v7x's 64 MiB VMEM, add a C-tiled two-pass variant (pass 1: sum/max
    # over C tiles; pass 2: re-stream C tiles and apply the gate).
    return out_flat.reshape(B, C, H, W)


def _reference(x, weight, k):
    # Pure-JAX reference mirroring the PyTorch forward exactly.
    avg_x = jnp.mean(x, axis=1, keepdims=True)
    max_x = jnp.max(x, axis=1, keepdims=True)
    inp = jnp.concatenate([max_x, avg_x], axis=1)
    v = jax.lax.conv_general_dilated(
        inp, weight, window_strides=(1, 1), padding="SAME",
        dimension_numbers=("NCHW", "OIHW", "NCHW"))
    return x * jax.nn.sigmoid(v)


if __name__ == "__main__":
    k = 7                       # kernel size (must be 3, 5 or 7)
    B, C, H, W = 2, 4, 16, 16

    key = jax.random.PRNGKey(0)
    kx, kw = jax.random.split(key)

    x = jax.random.normal(kx, (B, C, H, W), dtype=jnp.float32)

    # Deterministic Conv2d(2, 1, k, bias=False) init (kaiming-uniform-like).
    fan_in = 2 * k * k
    bound = 1.0 / np.sqrt(fan_in)
    weight = jax.random.uniform(kw, (1, 2, k, k), dtype=jnp.float32,
                                minval=-bound, maxval=bound)

    out = spatial_attention(x, weight, k)
    out = jax.block_until_ready(out)

    ref = jax.block_until_ready(_reference(x, weight, k))
    np.testing.assert_allclose(np.asarray(out), np.asarray(ref),
                               rtol=1e-5, atol=1e-5)
    print("KERNEL_OK")
</pallas_src>

<mosaic_0001>
module attributes {stable_mosaic.version = 11 : i64} {
  func.func @_sam_kernel(%arg0: i32, %arg1: memref<98xf32, #tpu.memory_space<smem>>, %arg2: memref<1x4x256xf32, #tpu.memory_space<vmem>>, %arg3: memref<14x256xf32, #tpu.memory_space<vmem>>, %arg4: memref<1x4x256xf32, #tpu.memory_space<vmem>>) attributes {dimension_semantics = [#tpu.dimension_semantics<parallel>], iteration_bounds = array<i64: 2>, scalar_prefetch = 1 : i64, scratch_operands = 0 : i64, tpu.core_type = #tpu.core_type<tc>, window_params = [{transform_indices = @transform_0, window_bounds = array<i64: 1, 4, 256>}, {pipeline_mode = #tpu.pipeline_mode<synchronous>, transform_indices = @transform_1, window_bounds = array<i64: 14, 256>}, {transform_indices = @transform_2, window_bounds = array<i64: 1, 4, 256>}]} {
    %c0 = arith.constant 0 : index
    %c0_0 = arith.constant 0 : index
    %c0_1 = arith.constant 0 : index
    %0 = vector.load %arg2[%c0, %c0_0, %c0_1] : memref<1x4x256xf32, #tpu.memory_space<vmem>>, vector<1x4x256xf32>
    %cst = arith.constant dense<0.000000e+00> : vector<1x256xf32>
    %1 = vector.multi_reduction <add>, %0, %cst [1] : vector<1x4x256xf32> to vector<1x256xf32>
    %cst_2 = arith.constant 4.000000e+00 : f32
    %2 = vector.broadcast %cst_2 : f32 to vector<1x256xf32>
    %3 = arith.divf %1, %2 : vector<1x256xf32>
    %cst_3 = arith.constant dense<0xFF800000> : vector<1x256xf32>
    %4 = vector.multi_reduction <maximumf>, %0, %cst_3 [1] : vector<1x4x256xf32> to vector<1x256xf32>
    %c3_i32 = arith.constant 3 : i32
    %5 = tpu.dynamic_rotate %4 by %c3_i32 dim 1 : vector<1x256xf32>, i32 -> vector<1x256xf32>
    %c0_4 = arith.constant 0 : index
    %c0_5 = arith.constant 0 : index
    %6 = vector.load %arg3[%c0_4, %c0_5] : memref<14x256xf32, #tpu.memory_space<vmem>>, vector<1x256xf32>
    %7 = arith.mulf %5, %6 : vector<1x256xf32>
    %c2_i32 = arith.constant 2 : i32
    %8 = tpu.dynamic_rotate %4 by %c2_i32 dim 1 : vector<1x256xf32>, i32 -> vector<1x256xf32>
    %c1 = arith.constant 1 : index
    %c0_6 = arith.constant 0 : index
    %9 = vector.load %arg3[%c1, %c0_6] : memref<14x256xf32, #tpu.memory_space<vmem>>, vector<1x256xf32>
    %10 = arith.mulf %8, %9 : vector<1x256xf32>
    %c1_i32 = arith.constant 1 : i32
    %11 = tpu.dynamic_rotate %4 by %c1_i32 dim 1 : vector<1x256xf32>, i32 -> vector<1x256xf32>
    %c2 = arith.constant 2 : index
    %c0_7 = arith.constant 0 : index
    %12 = vector.load %arg3[%c2, %c0_7] : memref<14x256xf32, #tpu.memory_space<vmem>>, vector<1x256xf32>
    %13 = arith.mulf %11, %12 : vector<1x256xf32>
    %c3 = arith.constant 3 : index
    %c0_8 = arith.constant 0 : index
    %14 = vector.load %arg3[%c3, %c0_8] : memref<14x256xf32, #tpu.memory_space<vmem>>, vector<1x256xf32>
    %15 = arith.mulf %4, %14 : vector<1x256xf32>
    %c255_i32 = arith.constant 255 : i32
    %16 = tpu.dynamic_rotate %4 by %c255_i32 dim 1 : vector<1x256xf32>, i32 -> vector<1x256xf32>
    %c4 = arith.constant 4 : index
    %c0_9 = arith.constant 0 : index
    %17 = vector.load %arg3[%c4, %c0_9] : memref<14x256xf32, #tpu.memory_space<vmem>>, vector<1x256xf32>
    %18 = arith.mulf %16, %17 : vector<1x256xf32>
    %c254_i32 = arith.constant 254 : i32
    %19 = tpu.dynamic_rotate %4 by %c254_i32 dim 1 : vector<1x256xf32>, i32 -> vector<1x256xf32>
    %c5 = arith.constant 5 : index
    %c0_10 = arith.constant 0 : index
    %20 = vector.load %arg3[%c5, %c0_10] : memref<14x256xf32, #tpu.memory_space<vmem>>, vector<1x256xf32>
    %21 = arith.mulf %19, %20 : vector<1x256xf32>
    %c253_i32 = arith.constant 253 : i32
    %22 = tpu.dynamic_rotate %4 by %c253_i32 dim 1 : vector<1x256xf32>, i32 -> vector<1x256xf32>
    %c6 = arith.constant 6 : index
    %c0_11 = arith.constant 0 : index
    %23 = vector.load %arg3[%c6, %c0_11] : memref<14x256xf32, #tpu.memory_space<vmem>>, vector<1x256xf32>
    %24 = arith.mulf %22, %23 : vector<1x256xf32>
    %c3_i32_12 = arith.constant 3 : i32
    %25 = tpu.dynamic_rotate %3 by %c3_i32_12 dim 1 : vector<1x256xf32>, i32 -> vector<1x256xf32>
    %c0_13 = arith.constant 0 : index
    %c0_14 = arith.constant 0 : index
    %26 = vector.load %arg3[%c0_13, %c0_14] : memref<14x256xf32, #tpu.memory_space<vmem>>, vector<1x256xf32>
    %27 = arith.mulf %25, %26 : vector<1x256xf32>
    %c2_i32_15 = arith.constant 2 : i32
    %28 = tpu.dynamic_rotate %3 by %c2_i32_15 dim 1 : vector<1x256xf32>, i32 -> vector<1x256xf32>
    %c1_16 = arith.constant 1 : index
    %c0_17 = arith.constant 0 : index
    %29 = vector.load %arg3[%c1_16, %c0_17] : memref<14x256xf32, #tpu.memory_space<vmem>>, vector<1x256xf32>
    %30 = arith.mulf %28, %29 : vector<1x256xf32>
    %c1_i32_18 = arith.constant 1 : i32
    %31 = tpu.dynamic_rotate %3 by %c1_i32_18 dim 1 : vector<1x256xf32>, i32 -> vector<1x256xf32>
    %c2_19 = arith.constant 2 : index
    %c0_20 = arith.constant 0 : index
    %32 = vector.load %arg3[%c2_19, %c0_20] : memref<14x256xf32, #tpu.memory_space<vmem>>, vector<1x256xf32>
    %33 = arith.mulf %31, %32 : vector<1x256xf32>
    %c3_21 = arith.constant 3 : index
    %c0_22 = arith.constant 0 : index
    %34 = vector.load %arg3[%c3_21, %c0_22] : memref<14x256xf32, #tpu.memory_space<vmem>>, vector<1x256xf32>
    %35 = arith.mulf %3, %34 : vector<1x256xf32>
    %c255_i32_23 = arith.constant 255 : i32
    %36 = tpu.dynamic_rotate %3 by %c255_i32_23 dim 1 : vector<1x256xf32>, i32 -> vector<1x256xf32>
    %c4_24 = arith.constant 4 : index
    %c0_25 = arith.constant 0 : index
    %37 = vector.load %arg3[%c4_24, %c0_25] : memref<14x256xf32, #tpu.memory_space<vmem>>, vector<1x256xf32>
    %38 = arith.mulf %36, %37 : vector<1x256xf32>
    %c254_i32_26 = arith.constant 254 : i32
    %39 = tpu.dynamic_rotate %3 by %c254_i32_26 dim 1 : vector<1x256xf32>, i32 -> vector<1x256xf32>
    %c5_27 = arith.constant 5 : index
    %c0_28 = arith.constant 0 : index
    %40 = vector.load %arg3[%c5_27, %c0_28] : memref<14x256xf32, #tpu.memory_space<vmem>>, vector<1x256xf32>
    %41 = arith.mulf %39, %40 : vector<1x256xf32>
    %c253_i32_29 = arith.constant 253 : i32
    %42 = tpu.dynamic_rotate %3 by %c253_i32_29 dim 1 : vector<1x256xf32>, i32 -> vector<1x256xf32>
    %c6_30 = arith.constant 6 : index
    %c0_31 = arith.constant 0 : index
    %43 = vector.load %arg3[%c6_30, %c0_31] : memref<14x256xf32, #tpu.memory_space<vmem>>, vector<1x256xf32>
    %44 = arith.mulf %42, %43 : vector<1x256xf32>
    %cst_32 = arith.constant 0.000000e+00 : f32
    %45 = vector.broadcast %cst_32 : f32 to vector<1x256xf32>
    %cst_33 = arith.constant 0.000000e+00 : f32
    %46 = vector.broadcast %cst_33 : f32 to vector<1x256xf32>
    %cst_34 = arith.constant 0.000000e+00 : f32
    %47 = vector.broadcast %cst_34 : f32 to vector<1x256xf32>
    %c0_35 = arith.constant 0 : index
    %48 = memref.load %arg1[%c0_35] : memref<98xf32, #tpu.memory_space<smem>>
    %49 = vector.broadcast %48 : f32 to vector<1x256xf32>
    %50 = arith.mulf %49, %7 : vector<1x256xf32>
    %51 = arith.addf %46, %50 : vector<1x256xf32>
    %c49 = arith.constant 49 : index
    %52 = memref.load %arg1[%c49] : memref<98xf32, #tpu.memory_space<smem>>
    %53 = vector.broadcast %52 : f32 to vector<1x256xf32>
    %54 = arith.mulf %53, %27 : vector<1x256xf32>
    %55 = arith.addf %47, %54 : vector<1x256xf32>
    %c1_36 = arith.constant 1 : index
    %56 = memref.load %arg1[%c1_36] : memref<98xf32, #tpu.memory_space<smem>>
    %57 = vector.broadcast %56 : f32 to vector<1x256xf32>
    %58 = arith.mulf %57, %10 : vector<1x256xf32>
    %59 = arith.addf %51, %58 : vector<1x256xf32>
    %c50 = arith.constant 50 : index
    %60 = memref.load %arg1[%c50] : memref<98xf32, #tpu.memory_space<smem>>
    %61 = vector.broadcast %60 : f32 to vector<1x256xf32>
    %62 = arith.mulf %61, %30 : vector<1x256xf32>
    %63 = arith.addf %55, %62 : vector<1x256xf32>
    %c2_37 = arith.constant 2 : index
    %64 = memref.load %arg1[%c2_37] : memref<98xf32, #tpu.memory_space<smem>>
    %65 = vector.broadcast %64 : f32 to vector<1x256xf32>
    %66 = arith.mulf %65, %13 : vector<1x256xf32>
    %67 = arith.addf %59, %66 : vector<1x256xf32>
    %c51 = arith.constant 51 : index
    %68 = memref.load %arg1[%c51] : memref<98xf32, #tpu.memory_space<smem>>
    %69 = vector.broadcast %68 : f32 to vector<1x256xf32>
    %70 = arith.mulf %69, %33 : vector<1x256xf32>
    %71 = arith.addf %63, %70 : vector<1x256xf32>
    %c3_38 = arith.constant 3 : index
    %72 = memref.load %arg1[%c3_38] : memref<98xf32, #tpu.memory_space<smem>>
    %73 = vector.broadcast %72 : f32 to vector<1x256xf32>
    %74 = arith.mulf %73, %15 : vector<1x256xf32>
    %75 = arith.addf %67, %74 : vector<1x256xf32>
    %c52 = arith.constant 52 : index
    %76 = memref.load %arg1[%c52] : memref<98xf32, #tpu.memory_space<smem>>
    %77 = vector.broadcast %76 : f32 to vector<1x256xf32>
    %78 = arith.mulf %77, %35 : vector<1x256xf32>
    %79 = arith.addf %71, %78 : vector<1x256xf32>
    %c4_39 = arith.constant 4 : index
    %80 = memref.load %arg1[%c4_39] : memref<98xf32, #tpu.memory_space<smem>>
    %81 = vector.broadcast %80 : f32 to vector<1x256xf32>
    %82 = arith.mulf %81, %18 : vector<1x256xf32>
    %83 = arith.addf %75, %82 : vector<1x256xf32>
    %c53 = arith.constant 53 : index
    %84 = memref.load %arg1[%c53] : memref<98xf32, #tpu.memory_space<smem>>
    %85 = vector.broadcast %84 : f32 to vector<1x256xf32>
    %86 = arith.mulf %85, %38 : vector<1x256xf32>
    %87 = arith.addf %79, %86 : vector<1x256xf32>
    %c5_40 = arith.constant 5 : index
    %88 = memref.load %arg1[%c5_40] : memref<98xf32, #tpu.memory_space<smem>>
    %89 = vector.broadcast %88 : f32 to vector<1x256xf32>
    %90 = arith.mulf %89, %21 : vector<1x256xf32>
    %91 = arith.addf %83, %90 : vector<1x256xf32>
    %c54 = arith.constant 54 : index
    %92 = memref.load %arg1[%c54] : memref<98xf32, #tpu.memory_space<smem>>
    %93 = vector.broadcast %92 : f32 to vector<1x256xf32>
    %94 = arith.mulf %93, %41 : vector<1x256xf32>
    %95 = arith.addf %87, %94 : vector<1x256xf32>
    %c6_41 = arith.constant 6 : index
    %96 = memref.load %arg1[%c6_41] : memref<98xf32, #tpu.memory_space<smem>>
    %97 = vector.broadcast %96 : f32 to vector<1x256xf32>
    %98 = arith.mulf %97, %24 : vector<1x256xf32>
    %99 = arith.addf %91, %98 : vector<1x256xf32>
    %c55 = arith.constant 55 : index
    %100 = memref.load %arg1[%c55] : memref<98xf32, #tpu.memory_space<smem>>
    %101 = vector.broadcast %100 : f32 to vector<1x256xf32>
    %102 = arith.mulf %101, %44 : vector<1x256xf32>
    %103 = arith.addf %95, %102 : vector<1x256xf32>
    %104 = arith.addf %99, %103 : vector<1x256xf32>
    %c48_i32 = arith.constant 48 : i32
    %105 = tpu.dynamic_rotate %104 by %c48_i32 dim 1 : vector<1x256xf32>, i32 -> vector<1x256xf32>
    %c7 = arith.constant 7 : index
    %c0_42 = arith.constant 0 : index
    %106 = vector.load %arg3[%c7, %c0_42] : memref<14x256xf32, #tpu.memory_space<vmem>>, vector<1x256xf32>
    %107 = arith.mulf %105, %106 : vector<1x256xf32>
    %108 = arith.addf %45, %107 : vector<1x256xf32>
    %cst_43 = arith.constant 0.000000e+00 : f32
    %109 = vector.broadcast %cst_43 : f32 to vector<1x256xf32>
    %cst_44 = arith.constant 0.000000e+00 : f32
    %110 = vector.broadcast %cst_44 : f32 to vector<1x256xf32>
    %c7_45 = arith.constant 7 : index
    %111 = memref.load %arg1[%c7_45] : memref<98xf32, #tpu.memory_space<smem>>
    %112 = vector.broadcast %111 : f32 to vector<1x256xf32>
    %113 = arith.mulf %112, %7 : vector<1x256xf32>
    %114 = arith.addf %109, %113 : vector<1x256xf32>
    %c56 = arith.constant 56 : index
    %115 = memref.load %arg1[%c56] : memref<98xf32, #tpu.memory_space<smem>>
    %116 = vector.broadcast %115 : f32 to vector<1x256xf32>
    %117 = arith.mulf %116, %27 : vector<1x256xf32>
    %118 = arith.addf %110, %117 : vector<1x256xf32>
    %c8 = arith.constant 8 : index
    %119 = memref.load %arg1[%c8] : memref<98xf32, #tpu.memory_space<smem>>
    %120 = vector.broadcast %119 : f32 to vector<1x256xf32>
    %121 = arith.mulf %120, %10 : vector<1x256xf32>
    %122 = arith.addf %114, %121 : vector<1x256xf32>
    %c57 = arith.constant 57 : index
    %123 = memref.load %arg1[%c57] : memref<98xf32, #tpu.memory_space<smem>>
    %124 = vector.broadcast %123 : f32 to vector<1x256xf32>
    %125 = arith.mulf %124, %30 : vector<1x256xf32>
    %126 = arith.addf %118, %125 : vector<1x256xf32>
    %c9 = arith.constant 9 : index
    %127 = memref.load %arg1[%c9] : memref<98xf32, #tpu.memory_space<smem>>
    %128 = vector.broadcast %127 : f32 to vector<1x256xf32>
    %129 = arith.mulf %128, %13 : vector<1x256xf32>
    %130 = arith.addf %122, %129 : vector<1x256xf32>
    %c58 = arith.constant 58 : index
    %131 = memref.load %arg1[%c58] : memref<98xf32, #tpu.memory_space<smem>>
    %132 = vector.broadcast %131 : f32 to vector<1x256xf32>
    %133 = arith.mulf %132, %33 : vector<1x256xf32>
    %134 = arith.addf %126, %133 : vector<1x256xf32>
    %c10 = arith.constant 10 : index
    %135 = memref.load %arg1[%c10] : memref<98xf32, #tpu.memory_space<smem>>
    %136 = vector.broadcast %135 : f32 to vector<1x256xf32>
    %137 = arith.mulf %136, %15 : vector<1x256xf32>
    %138 = arith.addf %130, %137 : vector<1x256xf32>
    %c59 = arith.constant 59 : index
    %139 = memref.load %arg1[%c59] : memref<98xf32, #tpu.memory_space<smem>>
    %140 = vector.broadcast %139 : f32 to vector<1x256xf32>
    %141 = arith.mulf %140, %35 : vector<1x256xf32>
    %142 = arith.addf %134, %141 : vector<1x256xf32>
    %c11 = arith.constant 11 : index
    %143 = memref.load %arg1[%c11] : memref<98xf32, #tpu.memory_space<smem>>
    %144 = vector.broadcast %143 : f32 to vector<1x256xf32>
    %145 = arith.mulf %144, %18 : vector<1x256xf32>
    %146 = arith.addf %138, %145 : vector<1x256xf32>
    %c60 = arith.constant 60 : index
    %147 = memref.load %arg1[%c60] : memref<98xf32, #tpu.memory_space<smem>>
    %148 = vector.broadcast %147 : f32 to vector<1x256xf32>
    %149 = arith.mulf %148, %38 : vector<1x256xf32>
    %150 = arith.addf %142, %149 : vector<1x256xf32>
    %c12 = arith.constant 12 : index
    %151 = memref.load %arg1[%c12] : memref<98xf32, #tpu.memory_space<smem>>
    %152 = vector.broadcast %151 : f32 to vector<1x256xf32>
    %153 = arith.mulf %152, %21 : vector<1x256xf32>
    %154 = arith.addf %146, %153 : vector<1x256xf32>
    %c61 = arith.constant 61 : index
    %155 = memref.load %arg1[%c61] : memref<98xf32, #tpu.memory_space<smem>>
    %156 = vector.broadcast %155 : f32 to vector<1x256xf32>
    %157 = arith.mulf %156, %41 : vector<1x256xf32>
    %158 = arith.addf %150, %157 : vector<1x256xf32>
    %c13 = arith.constant 13 : index
    %159 = memref.load %arg1[%c13] : memref<98xf32, #tpu.memory_space<smem>>
    %160 = vector.broadcast %159 : f32 to vector<1x256xf32>
    %161 = arith.mulf %160, %24 : vector<1x256xf32>
    %162 = arith.addf %154, %161 : vector<1x256xf32>
    %c62 = arith.constant 62 : index
    %163 = memref.load %arg1[%c62] : memref<98xf32, #tpu.memory_space<smem>>
    %164 = vector.broadcast %163 : f32 to vector<1x256xf32>
    %165 = arith.mulf %164, %44 : vector<1x256xf32>
    %166 = arith.addf %158, %165 : vector<1x256xf32>
    %167 = arith.addf %162, %166 : vector<1x256xf32>
    %c32_i32 = arith.constant 32 : i32
    %168 = tpu.dynamic_rotate %167 by %c32_i32 dim 1 : vector<1x256xf32>, i32 -> vector<1x256xf32>
    %c8_46 = arith.constant 8 : index
    %c0_47 = arith.constant 0 : index
    %169 = vector.load %arg3[%c8_46, %c0_47] : memref<14x256xf32, #tpu.memory_space<vmem>>, vector<1x256xf32>
    %170 = arith.mulf %168, %169 : vector<1x256xf32>
    %171 = arith.addf %108, %170 : vector<1x256xf32>
    %cst_48 = arith.constant 0.000000e+00 : f32
    %172 = vector.broadcast %cst_48 : f32 to vector<1x256xf32>
    %cst_49 = arith.constant 0.000000e+00 : f32
    %173 = vector.broadcast %cst_49 : f32 to vector<1x256xf32>
    %c14 = arith.constant 14 : index
    %174 = memref.load %arg1[%c14] : memref<98xf32, #tpu.memory_space<smem>>
    %175 = vector.broadcast %174 : f32 to vector<1x256xf32>
    %176 = arith.mulf %175, %7 : vector<1x256xf32>
    %177 = arith.addf %172, %176 : vector<1x256xf32>
    %c63 = arith.constant 63 : index
    %178 = memref.load %arg1[%c63] : memref<98xf32, #tpu.memory_space<smem>>
    %179 = vector.broadcast %178 : f32 to vector<1x256xf32>
    %180 = arith.mulf %179, %27 : vector<1x256xf32>
    %181 = arith.addf %173, %180 : vector<1x256xf32>
    %c15 = arith.constant 15 : index
    %182 = memref.load %arg1[%c15] : memref<98xf32, #tpu.memory_space<smem>>
    %183 = vector.broadcast %182 : f32 to vector<1x256xf32>
    %184 = arith.mulf %183, %10 : vector<1x256xf32>
    %185 = arith.addf %177, %184 : vector<1x256xf32>
    %c64 = arith.constant 64 : index
    %186 = memref.load %arg1[%c64] : memref<98xf32, #tpu.memory_space<smem>>
    %187 = vector.broadcast %186 : f32 to vector<1x256xf32>
    %188 = arith.mulf %187, %30 : vector<1x256xf32>
    %189 = arith.addf %181, %188 : vector<1x256xf32>
    %c16 = arith.constant 16 : index
    %190 = memref.load %arg1[%c16] : memref<98xf32, #tpu.memory_space<smem>>
    %191 = vector.broadcast %190 : f32 to vector<1x256xf32>
    %192 = arith.mulf %191, %13 : vector<1x256xf32>
    %193 = arith.addf %185, %192 : vector<1x256xf32>
    %c65 = arith.constant 65 : index
    %194 = memref.load %arg1[%c65] : memref<98xf32, #tpu.memory_space<smem>>
    %195 = vector.broadcast %194 : f32 to vector<1x256xf32>
    %196 = arith.mulf %195, %33 : vector<1x256xf32>
    %197 = arith.addf %189, %196 : vector<1x256xf32>
    %c17 = arith.constant 17 : index
    %198 = memref.load %arg1[%c17] : memref<98xf32, #tpu.memory_space<smem>>
    %199 = vector.broadcast %198 : f32 to vector<1x256xf32>
    %200 = arith.mulf %199, %15 : vector<1x256xf32>
    %201 = arith.addf %193, %200 : vector<1x256xf32>
    %c66 = arith.constant 66 : index
    %202 = memref.load %arg1[%c66] : memref<98xf32, #tpu.memory_space<smem>>
    %203 = vector.broadcast %202 : f32 to vector<1x256xf32>
    %204 = arith.mulf %203, %35 : vector<1x256xf32>
    %205 = arith.addf %197, %204 : vector<1x256xf32>
    %c18 = arith.constant 18 : index
    %206 = memref.load %arg1[%c18] : memref<98xf32, #tpu.memory_space<smem>>
    %207 = vector.broadcast %206 : f32 to vector<1x256xf32>
    %208 = arith.mulf %207, %18 : vector<1x256xf32>
    %209 = arith.addf %201, %208 : vector<1x256xf32>
    %c67 = arith.constant 67 : index
    %210 = memref.load %arg1[%c67] : memref<98xf32, #tpu.memory_space<smem>>
    %211 = vector.broadcast %210 : f32 to vector<1x256xf32>
    %212 = arith.mulf %211, %38 : vector<1x256xf32>
    %213 = arith.addf %205, %212 : vector<1x256xf32>
    %c19 = arith.constant 19 : index
    %214 = memref.load %arg1[%c19] : memref<98xf32, #tpu.memory_space<smem>>
    %215 = vector.broadcast %214 : f32 to vector<1x256xf32>
    %216 = arith.mulf %215, %21 : vector<1x256xf32>
    %217 = arith.addf %209, %216 : vector<1x256xf32>
    %c68 = arith.constant 68 : index
    %218 = memref.load %arg1[%c68] : memref<98xf32, #tpu.memory_space<smem>>
    %219 = vector.broadcast %218 : f32 to vector<1x256xf32>
    %220 = arith.mulf %219, %41 : vector<1x256xf32>
    %221 = arith.addf %213, %220 : vector<1x256xf32>
    %c20 = arith.constant 20 : index
    %222 = memref.load %arg1[%c20] : memref<98xf32, #tpu.memory_space<smem>>
    %223 = vector.broadcast %222 : f32 to vector<1x256xf32>
    %224 = arith.mulf %223, %24 : vector<1x256xf32>
    %225 = arith.addf %217, %224 : vector<1x256xf32>
    %c69 = arith.constant 69 : index
    %226 = memref.load %arg1[%c69] : memref<98xf32, #tpu.memory_space<smem>>
    %227 = vector.broadcast %226 : f32 to vector<1x256xf32>
    %228 = arith.mulf %227, %44 : vector<1x256xf32>
    %229 = arith.addf %221, %228 : vector<1x256xf32>
    %230 = arith.addf %225, %229 : vector<1x256xf32>
    %c16_i32 = arith.constant 16 : i32
    %231 = tpu.dynamic_rotate %230 by %c16_i32 dim 1 : vector<1x256xf32>, i32 -> vector<1x256xf32>
    %c9_50 = arith.constant 9 : index
    %c0_51 = arith.constant 0 : index
    %232 = vector.load %arg3[%c9_50, %c0_51] : memref<14x256xf32, #tpu.memory_space<vmem>>, vector<1x256xf32>
    %233 = arith.mulf %231, %232 : vector<1x256xf32>
    %234 = arith.addf %171, %233 : vector<1x256xf32>
    %cst_52 = arith.constant 0.000000e+00 : f32
    %235 = vector.broadcast %cst_52 : f32 to vector<1x256xf32>
    %cst_53 = arith.constant 0.000000e+00 : f32
    %236 = vector.broadcast %cst_53 : f32 to vector<1x256xf32>
    %c21 = arith.constant 21 : index
    %237 = memref.load %arg1[%c21] : memref<98xf32, #tpu.memory_space<smem>>
    %238 = vector.broadcast %237 : f32 to vector<1x256xf32>
    %239 = arith.mulf %238, %7 : vector<1x256xf32>
    %240 = arith.addf %235, %239 : vector<1x256xf32>
    %c70 = arith.constant 70 : index
    %241 = memref.load %arg1[%c70] : memref<98xf32, #tpu.memory_space<smem>>
    %242 = vector.broadcast %241 : f32 to vector<1x256xf32>
    %243 = arith.mulf %242, %27 : vector<1x256xf32>
    %244 = arith.addf %236, %243 : vector<1x256xf32>
    %c22 = arith.constant 22 : index
    %245 = memref.load %arg1[%c22] : memref<98xf32, #tpu.memory_space<smem>>
    %246 = vector.broadcast %245 : f32 to vector<1x256xf32>
    %247 = arith.mulf %246, %10 : vector<1x256xf32>
    %248 = arith.addf %240, %247 : vector<1x256xf32>
    %c71 = arith.constant 71 : index
    %249 = memref.load %arg1[%c71] : memref<98xf32, #tpu.memory_space<smem>>
    %250 = vector.broadcast %249 : f32 to vector<1x256xf32>
    %251 = arith.mulf %250, %30 : vector<1x256xf32>
    %252 = arith.addf %244, %251 : vector<1x256xf32>
    %c23 = arith.constant 23 : index
    %253 = memref.load %arg1[%c23] : memref<98xf32, #tpu.memory_space<smem>>
    %254 = vector.broadcast %253 : f32 to vector<1x256xf32>
    %255 = arith.mulf %254, %13 : vector<1x256xf32>
    %256 = arith.addf %248, %255 : vector<1x256xf32>
    %c72 = arith.constant 72 : index
    %257 = memref.load %arg1[%c72] : memref<98xf32, #tpu.memory_space<smem>>
    %258 = vector.broadcast %257 : f32 to vector<1x256xf32>
    %259 = arith.mulf %258, %33 : vector<1x256xf32>
    %260 = arith.addf %252, %259 : vector<1x256xf32>
    %c24 = arith.constant 24 : index
    %261 = memref.load %arg1[%c24] : memref<98xf32, #tpu.memory_space<smem>>
    %262 = vector.broadcast %261 : f32 to vector<1x256xf32>
    %263 = arith.mulf %262, %15 : vector<1x256xf32>
    %264 = arith.addf %256, %263 : vector<1x256xf32>
    %c73 = arith.constant 73 : index
    %265 = memref.load %arg1[%c73] : memref<98xf32, #tpu.memory_space<smem>>
    %266 = vector.broadcast %265 : f32 to vector<1x256xf32>
    %267 = arith.mulf %266, %35 : vector<1x256xf32>
    %268 = arith.addf %260, %267 : vector<1x256xf32>
    %c25 = arith.constant 25 : index
    %269 = memref.load %arg1[%c25] : memref<98xf32, #tpu.memory_space<smem>>
    %270 = vector.broadcast %269 : f32 to vector<1x256xf32>
    %271 = arith.mulf %270, %18 : vector<1x256xf32>
    %272 = arith.addf %264, %271 : vector<1x256xf32>
    %c74 = arith.constant 74 : index
    %273 = memref.load %arg1[%c74] : memref<98xf32, #tpu.memory_space<smem>>
    %274 = vector.broadcast %273 : f32 to vector<1x256xf32>
    %275 = arith.mulf %274, %38 : vector<1x256xf32>
    %276 = arith.addf %268, %275 : vector<1x256xf32>
    %c26 = arith.constant 26 : index
    %277 = memref.load %arg1[%c26] : memref<98xf32, #tpu.memory_space<smem>>
    %278 = vector.broadcast %277 : f32 to vector<1x256xf32>
    %279 = arith.mulf %278, %21 : vector<1x256xf32>
    %280 = arith.addf %272, %279 : vector<1x256xf32>
    %c75 = arith.constant 75 : index
    %281 = memref.load %arg1[%c75] : memref<98xf32, #tpu.memory_space<smem>>
    %282 = vector.broadcast %281 : f32 to vector<1x256xf32>
    %283 = arith.mulf %282, %41 : vector<1x256xf32>
    %284 = arith.addf %276, %283 : vector<1x256xf32>
    %c27 = arith.constant 27 : index
    %285 = memref.load %arg1[%c27] : memref<98xf32, #tpu.memory_space<smem>>
    %286 = vector.broadcast %285 : f32 to vector<1x256xf32>
    %287 = arith.mulf %286, %24 : vector<1x256xf32>
    %288 = arith.addf %280, %287 : vector<1x256xf32>
    %c76 = arith.constant 76 : index
    %289 = memref.load %arg1[%c76] : memref<98xf32, #tpu.memory_space<smem>>
    %290 = vector.broadcast %289 : f32 to vector<1x256xf32>
    %291 = arith.mulf %290, %44 : vector<1x256xf32>
    %292 = arith.addf %284, %291 : vector<1x256xf32>
    %293 = arith.addf %288, %292 : vector<1x256xf32>
    %c10_54 = arith.constant 10 : index
    %c0_55 = arith.constant 0 : index
    %294 = vector.load %arg3[%c10_54, %c0_55] : memref<14x256xf32, #tpu.memory_space<vmem>>, vector<1x256xf32>
    %295 = arith.mulf %293, %294 : vector<1x256xf32>
    %296 = arith.addf %234, %295 : vector<1x256xf32>
    %cst_56 = arith.constant 0.000000e+00 : f32
    %297 = vector.broadcast %cst_56 : f32 to vector<1x256xf32>
    %cst_57 = arith.constant 0.000000e+00 : f32
    %298 = vector.broadcast %cst_57 : f32 to vector<1x256xf32>
    %c28 = arith.constant 28 : index
    %299 = memref.load %arg1[%c28] : memref<98xf32, #tpu.memory_space<smem>>
    %300 = vector.broadcast %299 : f32 to vector<1x256xf32>
    %301 = arith.mulf %300, %7 : vector<1x256xf32>
    %302 = arith.addf %297, %301 : vector<1x256xf32>
    %c77 = arith.constant 77 : index
    %303 = memref.load %arg1[%c77] : memref<98xf32, #tpu.memory_space<smem>>
    %304 = vector.broadcast %303 : f32 to vector<1x256xf32>
    %305 = arith.mulf %304, %27 : vector<1x256xf32>
    %306 = arith.addf %298, %305 : vector<1x256xf32>
    %c29 = arith.constant 29 : index
    %307 = memref.load %arg1[%c29] : memref<98xf32, #tpu.memory_space<smem>>
    %308 = vector.broadcast %307 : f32 to vector<1x256xf32>
    %309 = arith.mulf %308, %10 : vector<1x256xf32>
    %310 = arith.addf %302, %309 : vector<1x256xf32>
    %c78 = arith.constant 78 : index
    %311 = memref.load %arg1[%c78] : memref<98xf32, #tpu.memory_space<smem>>
    %312 = vector.broadcast %311 : f32 to vector<1x256xf32>
    %313 = arith.mulf %312, %30 : vector<1x256xf32>
    %314 = arith.addf %306, %313 : vector<1x256xf32>
    %c30 = arith.constant 30 : index
    %315 = memref.load %arg1[%c30] : memref<98xf32, #tpu.memory_space<smem>>
    %316 = vector.broadcast %315 : f32 to vector<1x256xf32>
    %317 = arith.mulf %316, %13 : vector<1x256xf32>
    %318 = arith.addf %310, %317 : vector<1x256xf32>
    %c79 = arith.constant 79 : index
    %319 = memref.load %arg1[%c79] : memref<98xf32, #tpu.memory_space<smem>>
    %320 = vector.broadcast %319 : f32 to vector<1x256xf32>
    %321 = arith.mulf %320, %33 : vector<1x256xf32>
    %322 = arith.addf %314, %321 : vector<1x256xf32>
    %c31 = arith.constant 31 : index
    %323 = memref.load %arg1[%c31] : memref<98xf32, #tpu.memory_space<smem>>
    %324 = vector.broadcast %323 : f32 to vector<1x256xf32>
    %325 = arith.mulf %324, %15 : vector<1x256xf32>
    %326 = arith.addf %318, %325 : vector<1x256xf32>
    %c80 = arith.constant 80 : index
    %327 = memref.load %arg1[%c80] : memref<98xf32, #tpu.memory_space<smem>>
    %328 = vector.broadcast %327 : f32 to vector<1x256xf32>
    %329 = arith.mulf %328, %35 : vector<1x256xf32>
    %330 = arith.addf %322, %329 : vector<1x256xf32>
    %c32 = arith.constant 32 : index
    %331 = memref.load %arg1[%c32] : memref<98xf32, #tpu.memory_space<smem>>
    %332 = vector.broadcast %331 : f32 to vector<1x256xf32>
    %333 = arith.mulf %332, %18 : vector<1x256xf32>
    %334 = arith.addf %326, %333 : vector<1x256xf32>
    %c81 = arith.constant 81 : index
    %335 = memref.load %arg1[%c81] : memref<98xf32, #tpu.memory_space<smem>>
    %336 = vector.broadcast %335 : f32 to vector<1x256xf32>
    %337 = arith.mulf %336, %38 : vector<1x256xf32>
    %338 = arith.addf %330, %337 : vector<1x256xf32>
    %c33 = arith.constant 33 : index
    %339 = memref.load %arg1[%c33] : memref<98xf32, #tpu.memory_space<smem>>
    %340 = vector.broadcast %339 : f32 to vector<1x256xf32>
    %341 = arith.mulf %340, %21 : vector<1x256xf32>
    %342 = arith.addf %334, %341 : vector<1x256xf32>
    %c82 = arith.constant 82 : index
    %343 = memref.load %arg1[%c82] : memref<98xf32, #tpu.memory_space<smem>>
    %344 = vector.broadcast %343 : f32 to vector<1x256xf32>
    %345 = arith.mulf %344, %41 : vector<1x256xf32>
    %346 = arith.addf %338, %345 : vector<1x256xf32>
    %c34 = arith.constant 34 : index
    %347 = memref.load %arg1[%c34] : memref<98xf32, #tpu.memory_space<smem>>
    %348 = vector.broadcast %347 : f32 to vector<1x256xf32>
    %349 = arith.mulf %348, %24 : vector<1x256xf32>
    %350 = arith.addf %342, %349 : vector<1x256xf32>
    %c83 = arith.constant 83 : index
    %351 = memref.load %arg1[%c83] : memref<98xf32, #tpu.memory_space<smem>>
    %352 = vector.broadcast %351 : f32 to vector<1x256xf32>
    %353 = arith.mulf %352, %44 : vector<1x256xf32>
    %354 = arith.addf %346, %353 : vector<1x256xf32>
    %355 = arith.addf %350, %354 : vector<1x256xf32>
    %c240_i32 = arith.constant 240 : i32
    %356 = tpu.dynamic_rotate %355 by %c240_i32 dim 1 : vector<1x256xf32>, i32 -> vector<1x256xf32>
    %c11_58 = arith.constant 11 : index
    %c0_59 = arith.constant 0 : index
    %357 = vector.load %arg3[%c11_58, %c0_59] : memref<14x256xf32, #tpu.memory_space<vmem>>, vector<1x256xf32>
    %358 = arith.mulf %356, %357 : vector<1x256xf32>
    %359 = arith.addf %296, %358 : vector<1x256xf32>
    %cst_60 = arith.constant 0.000000e+00 : f32
    %360 = vector.broadcast %cst_60 : f32 to vector<1x256xf32>
    %cst_61 = arith.constant 0.000000e+00 : f32
    %361 = vector.broadcast %cst_61 : f32 to vector<1x256xf32>
    %c35 = arith.constant 35 : index
    %362 = memref.load %arg1[%c35] : memref<98xf32, #tpu.memory_space<smem>>
    %363 = vector.broadcast %362 : f32 to vector<1x256xf32>
    %364 = arith.mulf %363, %7 : vector<1x256xf32>
    %365 = arith.addf %360, %364 : vector<1x256xf32>
    %c84 = arith.constant 84 : index
    %366 = memref.load %arg1[%c84] : memref<98xf32, #tpu.memory_space<smem>>
    %367 = vector.broadcast %366 : f32 to vector<1x256xf32>
    %368 = arith.mulf %367, %27 : vector<1x256xf32>
    %369 = arith.addf %361, %368 : vector<1x256xf32>
    %c36 = arith.constant 36 : index
    %370 = memref.load %arg1[%c36] : memref<98xf32, #tpu.memory_space<smem>>
    %371 = vector.broadcast %370 : f32 to vector<1x256xf32>
    %372 = arith.mulf %371, %10 : vector<1x256xf32>
    %373 = arith.addf %365, %372 : vector<1x256xf32>
    %c85 = arith.constant 85 : index
    %374 = memref.load %arg1[%c85] : memref<98xf32, #tpu.memory_space<smem>>
    %375 = vector.broadcast %374 : f32 to vector<1x256xf32>
    %376 = arith.mulf %375, %30 : vector<1x256xf32>
    %377 = arith.addf %369, %376 : vector<1x256xf32>
    %c37 = arith.constant 37 : index
    %378 = memref.load %arg1[%c37] : memref<98xf32, #tpu.memory_space<smem>>
    %379 = vector.broadcast %378 : f32 to vector<1x256xf32>
    %380 = arith.mulf %379, %13 : vector<1x256xf32>
    %381 = arith.addf %373, %380 : vector<1x256xf32>
    %c86 = arith.constant 86 : index
    %382 = memref.load %arg1[%c86] : memref<98xf32, #tpu.memory_space<smem>>
    %383 = vector.broadcast %382 : f32 to vector<1x256xf32>
    %384 = arith.mulf %383, %33 : vector<1x256xf32>
    %385 = arith.addf %377, %384 : vector<1x256xf32>
    %c38 = arith.constant 38 : index
    %386 = memref.load %arg1[%c38] : memref<98xf32, #tpu.memory_space<smem>>
    %387 = vector.broadcast %386 : f32 to vector<1x256xf32>
    %388 = arith.mulf %387, %15 : vector<1x256xf32>
    %389 = arith.addf %381, %388 : vector<1x256xf32>
    %c87 = arith.constant 87 : index
    %390 = memref.load %arg1[%c87] : memref<98xf32, #tpu.memory_space<smem>>
    %391 = vector.broadcast %390 : f32 to vector<1x256xf32>
    %392 = arith.mulf %391, %35 : vector<1x256xf32>
    %393 = arith.addf %385, %392 : vector<1x256xf32>
    %c39 = arith.constant 39 : index
    %394 = memref.load %arg1[%c39] : memref<98xf32, #tpu.memory_space<smem>>
    %395 = vector.broadcast %394 : f32 to vector<1x256xf32>
    %396 = arith.mulf %395, %18 : vector<1x256xf32>
    %397 = arith.addf %389, %396 : vector<1x256xf32>
    %c88 = arith.constant 88 : index
    %398 = memref.load %arg1[%c88] : memref<98xf32, #tpu.memory_space<smem>>
    %399 = vector.broadcast %398 : f32 to vector<1x256xf32>
    %400 = arith.mulf %399, %38 : vector<1x256xf32>
    %401 = arith.addf %393, %400 : vector<1x256xf32>
    %c40 = arith.constant 40 : index
    %402 = memref.load %arg1[%c40] : memref<98xf32, #tpu.memory_space<smem>>
    %403 = vector.broadcast %402 : f32 to vector<1x256xf32>
    %404 = arith.mulf %403, %21 : vector<1x256xf32>
    %405 = arith.addf %397, %404 : vector<1x256xf32>
    %c89 = arith.constant 89 : index
    %406 = memref.load %arg1[%c89] : memref<98xf32, #tpu.memory_space<smem>>
    %407 = vector.broadcast %406 : f32 to vector<1x256xf32>
    %408 = arith.mulf %407, %41 : vector<1x256xf32>
    %409 = arith.addf %401, %408 : vector<1x256xf32>
    %c41 = arith.constant 41 : index
    %410 = memref.load %arg1[%c41] : memref<98xf32, #tpu.memory_space<smem>>
    %411 = vector.broadcast %410 : f32 to vector<1x256xf32>
    %412 = arith.mulf %411, %24 : vector<1x256xf32>
    %413 = arith.addf %405, %412 : vector<1x256xf32>
    %c90 = arith.constant 90 : index
    %414 = memref.load %arg1[%c90] : memref<98xf32, #tpu.memory_space<smem>>
    %415 = vector.broadcast %414 : f32 to vector<1x256xf32>
    %416 = arith.mulf %415, %44 : vector<1x256xf32>
    %417 = arith.addf %409, %416 : vector<1x256xf32>
    %418 = arith.addf %413, %417 : vector<1x256xf32>
    %c224_i32 = arith.constant 224 : i32
    %419 = tpu.dynamic_rotate %418 by %c224_i32 dim 1 : vector<1x256xf32>, i32 -> vector<1x256xf32>
    %c12_62 = arith.constant 12 : index
    %c0_63 = arith.constant 0 : index
    %420 = vector.load %arg3[%c12_62, %c0_63] : memref<14x256xf32, #tpu.memory_space<vmem>>, vector<1x256xf32>
    %421 = arith.mulf %419, %420 : vector<1x256xf32>
    %422 = arith.addf %359, %421 : vector<1x256xf32>
    %cst_64 = arith.constant 0.000000e+00 : f32
    %423 = vector.broadcast %cst_64 : f32 to vector<1x256xf32>
    %cst_65 = arith.constant 0.000000e+00 : f32
    %424 = vector.broadcast %cst_65 : f32 to vector<1x256xf32>
    %c42 = arith.constant 42 : index
    %425 = memref.load %arg1[%c42] : memref<98xf32, #tpu.memory_space<smem>>
    %426 = vector.broadcast %425 : f32 to vector<1x256xf32>
    %427 = arith.mulf %426, %7 : vector<1x256xf32>
    %428 = arith.addf %423, %427 : vector<1x256xf32>
    %c91 = arith.constant 91 : index
    %429 = memref.load %arg1[%c91] : memref<98xf32, #tpu.memory_space<smem>>
    %430 = vector.broadcast %429 : f32 to vector<1x256xf32>
    %431 = arith.mulf %430, %27 : vector<1x256xf32>
    %432 = arith.addf %424, %431 : vector<1x256xf32>
    %c43 = arith.constant 43 : index
    %433 = memref.load %arg1[%c43] : memref<98xf32, #tpu.memory_space<smem>>
    %434 = vector.broadcast %433 : f32 to vector<1x256xf32>
    %435 = arith.mulf %434, %10 : vector<1x256xf32>
    %436 = arith.addf %428, %435 : vector<1x256xf32>
    %c92 = arith.constant 92 : index
    %437 = memref.load %arg1[%c92] : memref<98xf32, #tpu.memory_space<smem>>
    %438 = vector.broadcast %437 : f32 to vector<1x256xf32>
    %439 = arith.mulf %438, %30 : vector<1x256xf32>
    %440 = arith.addf %432, %439 : vector<1x256xf32>
    %c44 = arith.constant 44 : index
    %441 = memref.load %arg1[%c44] : memref<98xf32, #tpu.memory_space<smem>>
    %442 = vector.broadcast %441 : f32 to vector<1x256xf32>
    %443 = arith.mulf %442, %13 : vector<1x256xf32>
    %444 = arith.addf %436, %443 : vector<1x256xf32>
    %c93 = arith.constant 93 : index
    %445 = memref.load %arg1[%c93] : memref<98xf32, #tpu.memory_space<smem>>
    %446 = vector.broadcast %445 : f32 to vector<1x256xf32>
    %447 = arith.mulf %446, %33 : vector<1x256xf32>
    %448 = arith.addf %440, %447 : vector<1x256xf32>
    %c45 = arith.constant 45 : index
    %449 = memref.load %arg1[%c45] : memref<98xf32, #tpu.memory_space<smem>>
    %450 = vector.broadcast %449 : f32 to vector<1x256xf32>
    %451 = arith.mulf %450, %15 : vector<1x256xf32>
    %452 = arith.addf %444, %451 : vector<1x256xf32>
    %c94 = arith.constant 94 : index
    %453 = memref.load %arg1[%c94] : memref<98xf32, #tpu.memory_space<smem>>
    %454 = vector.broadcast %453 : f32 to vector<1x256xf32>
    %455 = arith.mulf %454, %35 : vector<1x256xf32>
    %456 = arith.addf %448, %455 : vector<1x256xf32>
    %c46 = arith.constant 46 : index
    %457 = memref.load %arg1[%c46] : memref<98xf32, #tpu.memory_space<smem>>
    %458 = vector.broadcast %457 : f32 to vector<1x256xf32>
    %459 = arith.mulf %458, %18 : vector<1x256xf32>
    %460 = arith.addf %452, %459 : vector<1x256xf32>
    %c95 = arith.constant 95 : index
    %461 = memref.load %arg1[%c95] : memref<98xf32, #tpu.memory_space<smem>>
    %462 = vector.broadcast %461 : f32 to vector<1x256xf32>
    %463 = arith.mulf %462, %38 : vector<1x256xf32>
    %464 = arith.addf %456, %463 : vector<1x256xf32>
    %c47 = arith.constant 47 : index
    %465 = memref.load %arg1[%c47] : memref<98xf32, #tpu.memory_space<smem>>
    %466 = vector.broadcast %465 : f32 to vector<1x256xf32>
    %467 = arith.mulf %466, %21 : vector<1x256xf32>
    %468 = arith.addf %460, %467 : vector<1x256xf32>
    %c96 = arith.constant 96 : index
    %469 = memref.load %arg1[%c96] : memref<98xf32, #tpu.memory_space<smem>>
    %470 = vector.broadcast %469 : f32 to vector<1x256xf32>
    %471 = arith.mulf %470, %41 : vector<1x256xf32>
    %472 = arith.addf %464, %471 : vector<1x256xf32>
    %c48 = arith.constant 48 : index
    %473 = memref.load %arg1[%c48] : memref<98xf32, #tpu.memory_space<smem>>
    %474 = vector.broadcast %473 : f32 to vector<1x256xf32>
    %475 = arith.mulf %474, %24 : vector<1x256xf32>
    %476 = arith.addf %468, %475 : vector<1x256xf32>
    %c97 = arith.constant 97 : index
    %477 = memref.load %arg1[%c97] : memref<98xf32, #tpu.memory_space<smem>>
    %478 = vector.broadcast %477 : f32 to vector<1x256xf32>
    %479 = arith.mulf %478, %44 : vector<1x256xf32>
    %480 = arith.addf %472, %479 : vector<1x256xf32>
    %481 = arith.addf %476, %480 : vector<1x256xf32>
    %c208_i32 = arith.constant 208 : i32
    %482 = tpu.dynamic_rotate %481 by %c208_i32 dim 1 : vector<1x256xf32>, i32 -> vector<1x256xf32>
    %c13_66 = arith.constant 13 : index
    %c0_67 = arith.constant 0 : index
    %483 = vector.load %arg3[%c13_66, %c0_67] : memref<14x256xf32, #tpu.memory_space<vmem>>, vector<1x256xf32>
    %484 = arith.mulf %482, %483 : vector<1x256xf32>
    %485 = arith.addf %422, %484 : vector<1x256xf32>
    %cst_68 = arith.constant 0.000000e+00 : f32
    %486 = vector.broadcast %cst_68 : f32 to vector<1x256xf32>
    %487 = arith.subf %486, %485 : vector<1x256xf32>
    %488 = math.exp %487 : vector<1x256xf32>
    %cst_69 = arith.constant 1.000000e+00 : f32
    %489 = vector.broadcast %cst_69 : f32 to vector<1x256xf32>
    %490 = arith.addf %489, %488 : vector<1x256xf32>
    %cst_70 = arith.constant 1.000000e+00 : f32
    %491 = vector.broadcast %cst_70 : f32 to vector<1x256xf32>
    %492 = arith.divf %491, %490 : vector<1x256xf32>
    %493 = vector.shape_cast %492 : vector<1x256xf32> to vector<1x1x256xf32>
    %494 = vector.broadcast %493 : vector<1x1x256xf32> to vector<1x4x256xf32>
    %495 = arith.mulf %0, %494 : vector<1x4x256xf32>
    %c0_71 = arith.constant 0 : index
    %c0_72 = arith.constant 0 : index
    %c0_73 = arith.constant 0 : index
    %496 = vector.load %arg4[%c0_71, %c0_72, %c0_73] : memref<1x4x256xf32, #tpu.memory_space<vmem>>, vector<1x4x256xf32>
    tpu.vector_store %arg4[%c0_71, %c0_72, %c0_73], %495 {strides = array<i32>} : memref<1x4x256xf32, #tpu.memory_space<vmem>>, vector<1x4x256xf32>,
    return
  }
  func.func @transform_0(%arg0: i32, %arg1: memref<98xf32, #tpu.memory_space<smem>>) -> (i32, i32, i32) {
    %c0_i32 = arith.constant 0 : i32
    %c0_i32_0 = arith.constant 0 : i32
    %c0_i32_1 = arith.constant 0 : i32
    return %arg0, %c0_i32, %c0_i32_0 : i32, i32, i32
  }
  func.func @transform_1(%arg0: i32, %arg1: memref<98xf32, #tpu.memory_space<smem>>) -> (i32, i32) {
    %c0_i32 = arith.constant 0 : i32
    %c0_i32_0 = arith.constant 0 : i32
    %c0_i32_1 = arith.constant 0 : i32
    return %c0_i32, %c0_i32_0 : i32, i32
  }
  func.func @transform_2(%arg0: i32, %arg1: memref<98xf32, #tpu.memory_space<smem>>) -> (i32, i32, i32) {
    %c0_i32 = arith.constant 0 : i32
    %c0_i32_0 = arith.constant 0 : i32
    %c0_i32_1 = arith.constant 0 : i32
    return %arg0, %c0_i32, %c0_i32_0 : i32, i32, i32
  }
}

</mosaic_0001>

<bundles_post_ra>
// kernel: tpu_custom_call.1
= control target key start
LH: loop header
LB: loop body
LE: loop exit
PB: predicated region body
PF: predicated region fallthrough
CT: control target
= control target key end

     0   :  { %s3057_s0 = inlined_call_operand.hbm [shape: f32[98], index: 0, kind: input, shape index: {}]   ;;  %s3058_s1 = inlined_call_operand.hbm [shape: f32[2,4,256], index: 1, kind: input, shape index: {}]   ;;  %s3059_s2 = inlined_call_operand.hbm [shape: f32[14,256], index: 2, kind: input, shape index: {}]   ;;  %s3060_s3 = inlined_call_operand.hbm [shape: f32[2,4,256], index: 3, kind: output, shape index: {}]  }
   0x1   :  { %3202 = sst [smem:[#allocation105_spill]] %s3058_s1  ;;  %s1495_s14 = scalar_lea.hbm %s3057_s0, 16 }
   0x2   :  { %3203 = sst [smem:[#allocation106_spill]] %s3059_s2  ;;  %p1496_p0 = scmp.ne.s32.totalorder %s3057_s0, %s1495_s14 }
   0x3   :  { %3204 = sst [smem:[#allocation107_spill]] %s3060_s3  ;;  %p1499_p1 = scmp.lt.u32.totalorder %s1495_s14, %s3057_s0 }
   0x5   :  { %p1501_p2 = pnand %p1499_p1, %p1496_p0 }
   0x7   :  { %1504 = shalt.err (!%p1501_p2)  }
   0x8   :  { %s1637_s19 = smov [#allocation3]  }
   0x9   :  { %9 = dma.hbm_to_smem %s3057_s0, 16, %s1637_s19, [#allocation2] }
   0xa   :  { %1607 = dma.done.wait [#allocation2], 16 }
   0xb   :  { %1608 = vsyncadd [#allocation2], 4294967280 }
   0xc   :  { %11 = sfence }
   0xd   :  { %12 = vsyncpa [#allocation5], 0 }
   0xe   :  { %14 = vsyncpa [#allocation5 + $0x1], 0 }
   0xf   :  { %15 = vsyncpa [#allocation8], 0 }
  0x10   :  { %16 = vsyncpa [#allocation6], 0 }
  0x11   :  { %18 = vsyncpa [#allocation6 + $0x1], 0  ;;  %s1687_s22 = smov 0   ;;  %s1689_s23 = smov 0  }
  0x12   :  { %s1691_s24 = smov 0   ;;  %s1693_s25 = smov 0  }
  0x13 LB: > { %3205 = sst [smem:[#allocation14_spill]] %s1623_s22  ;;  %s1708_s0 = sadd.s32 4294967295, %s1635_s25   ;;  %s1635_s25 = sphi %s1693_s25, %s3574_s25   ;;  %s1631_s24 = sphi %s1691_s24, %s3577_s24   ;;  %s1627_s23 = sphi %s1689_s23, %s3576_s23   ;;  %s1623_s22 = sphi %s1687_s22, %s3575_s22  }
  0x14   : > { %3206 = sst [smem:[#allocation15_spill]] %s1627_s23  ;;  %s1298_s26 = sadd.s32 4294967294, %s1635_s25  }
  0x15   : > { %3207 = sst [smem:[#allocation16_spill]] %s1631_s24  ;;  %p44_p3 = scmp.ne.s32.totalorder %s1627_s23, %s1623_s22 }
  0x16   : > { %3208 = sst [smem:[#allocation17_spill]] %s1635_s25  ;;  %p3061_p4 = scmp.eq.s32.totalorder %s1708_s0, 0 }
  0x17   : > { %3209 = sst [smem:[#allocation18_spill]] %s1708_s0  ;;  %p95_p6 = scmp.eq.s32.totalorder %s1298_s26, 1 }
  0x18   : > { %p1717_p7 = por %p3061_p4, %p44_p3  ;;  %p1299_p8 = scmp.ge.s32.totalorder %s1635_s25, 1 }
  0x19   : > { %p1722_p9 = por %p95_p6, %p44_p3  ;;  %p102_p10 = scmp.lt.s32.totalorder %s1635_s25, 3 }
  0x1a   : > { %s3210_s27 = scalar_select %p1717_p7, 1, 0 }
  0x1b   : > { %s3211_s28 = scalar_select %p1722_p9, 1, 0 }
  0x1c   : > { %p1727_p11 = pnand %p1299_p8, %p102_p10  ;;  %s1638_s30 = smov [#allocation7]  }
  0x1d   : > { %3212 = sst [smem:[#allocation19_spill]] %s3211_s28  ;;  %s114_s4 = sshll.u32 %s1638_s30, 4  ;;  %s1731_s4 = int_to_ptr.vmem [resolvable:$true] %s114_s4 }
  0x1e   : > { %s3213_s29 = scalar_select %p1727_p11, 1, 0 }
  0x1f   : > { %p1421_p12 = pneg %p1727_p11  ;;  %s1743_s6 = sadd.s32 1, %s1635_s25  }
  0x20   : > { %3215 = sst [smem:[#allocation20_spill]] %s1743_s6  ;;  %s31_s7 = sadd.s32 1, %s1631_s24 }
  0x21   : > { %p1738_p0 = pnand %p1421_p12, %p3061_p4  ;;  %s28_s8 = ssub.s32 %s1635_s25, %s1743_s6 }
  0x22   : > { %s3216_s2 = sld [smem:[#allocation106_spill]] }
  0x23   : > { %p1507_p2 = pneg %p1738_p0 }
  0x28   : > { %s1505_s11 = scalar_lea.hbm %s3216_s2, 512 }
  0x29   : > { %p1506_p1 = scmp.ne.s32.totalorder %s3216_s2, %s1505_s11  ;;  %p1512_p8 = scmp.lt.u32.totalorder %s1505_s11, %s3216_s2 }
  0x2b   : > { %p1508_p3 = pnand %p1507_p2, %p1506_p1 }
  0x2d   : > { %p1509_p6 = pneg %p1508_p3 }
  0x2f   : > { %p1514_p10 = pnand %p1512_p8, %p1509_p6 }
  0x31   : > { %1517 = shalt.err (!%p1514_p10)
}
  0x32   : > { %s1518_s16 = scalar_lea.vmem %s1731_s4, 512  ;;  %p1526_p5 = scmp.lt.s32.totalorder %s1731_s4, %s1731_s4 }
  0x33   : > { %p1519_p12 = scmp.ne.s32.totalorder %s1731_s4, %s1518_s16  ;;  %p1527_p9 = scmp.lt.s32.totalorder %s1518_s16, %s1518_s16 }
  0x35   : > { %p1521_p13 = pnand %p1519_p12, %p1507_p2  ;;  %p1528_p7 = por %p1527_p9, %p1526_p5 }
  0x37   : > { %p1522_p4 = pneg %p1521_p13 }
  0x39   : > { %p1529_p11 = pnand %p1528_p7, %p1522_p4 }
  0x3b   : > { %1532 = shalt.err (!%p1529_p11)
}
  0x3c   : > { %s1639_s17 = smov 256   ;;  %s1640_s18 = smov 16  }
  0x3d   : > { %1424 = dma.hbm_to_vmem [thread:$0]  (!%p1738_p0), %s3216_s2, 512, %s1731_s4, [#allocation8], %s1639_s17, %s1639_s17, %s1640_s18  }
  0x3e   : > { %p29_p5 = scmp.eq.s32.totalorder %s28_s8, 0  ;;  %p38_p4 = scmp.ne.s32.totalorder %s1631_s24, %s1627_s23 }
  0x3f   : > { %p39_p7 = scmp.eq.s32.totalorder %s1635_s25, 0  ;;  %p1434_p9 = scmp.lt.s32.totalorder %s1635_s25, 2 }
  0x40   : > { %s1774_s21 = scalar_select %p29_p5, %s1631_s24, %s31_s7  }
  0x41   : > { %p40_p11 = por %p39_p7, %p38_p4  ;;  %p3218_p13 = scmp.eq.s32.totalorder %s1708_s0, 1 }
  0x42   : > { %3217 = sst [smem:[#allocation21_spill]] %s1774_s21  ;;  %s128_s30 = sand.u32 1, %s1631_s24  }
  0x43   : > { %p1778_p1 = por %p3218_p13, %p38_p4  ;;  %s1411_s9 = sshll.u32 %s1635_s25, 7 }
  0x44   : > { %s1302_s10 = sshll.u32 %s128_s30, 3  ;;  %s3221_s1 = sld [smem:[#allocation105_spill]] }
  0x45   : > { %s3219_s26 = scalar_select %p1778_p1, 1, 0 }
  0x46   : > { %s132_s4 = scalar_lea.vmem [#allocation4], %s1302_s10  ;;  %p1789_p0 = pnand %p1434_p9, %p40_p11 }
  0x47   : > { %3220 = sst [smem:[#allocation22_spill]] %s3219_s26  ;;  %s140_s7 = sshll.u32 %s132_s4, 4  ;;  %s1793_s7 = int_to_ptr.vmem [resolvable:$true] %s140_s7 }
  0x48   : > { %s129_s13 = scalar_lea.sflag [#allocation5], %s128_s30  ;;  %p1535_p3 = pneg %p1789_p0 }
  0x4a   : > { %s1787_s12 = scalar_lea.hbm %s3221_s1, %s1411_s9  ;;  %s1538_s17 = scalar_lea.hbm %s3221_s1, 256 }
  0x4b   : > { %s1533_s14 = scalar_lea.hbm %s1787_s12, 128  ;;  %p1539_p10 = scmp.lt.u32.totalorder %s1787_s12, %s3221_s1 }
  0x4c   : > { %p1534_p2 = scmp.ne.s32.totalorder %s1787_s12, %s1533_s14  ;;  %p1540_p12 = scmp.lt.u32.totalorder %s1538_s17, %s1533_s14 }
  0x4d   : > { %p1542_p4 = scmp.lt.u32.totalorder %s1533_s14, %s1787_s12 }
  0x4e   : > { %p1536_p6 = pnand %p1535_p3, %p1534_p2  ;;  %p1541_p5 = por %p1540_p12, %p1539_p10 }
  0x50   : > { %p1537_p8 = pneg %p1536_p6  ;;  %p1543_p7 = por %p1542_p4, %p1541_p5 }
  0x52   : > { %p1544_p9 = pnand %p1543_p7, %p1537_p8 }
  0x54   : > { %1547 = shalt.err (!%p1544_p9)
}
  0x55   : > { %s1548_s20 = scalar_lea.vmem %s1793_s7, 128  ;;  %s1641_s30 = smov [#allocation4]  }
  0x56   : > { %p1549_p11 = scmp.ne.s32.totalorder %s1793_s7, %s1548_s20  ;;  %s1553_s9 = sshll.u32 %s1641_s30, 4  ;;  %s1554_s9 = int_to_ptr.vmem [resolvable:$false] %s1553_s9 }
  0x57   : > { %s1555_s10 = scalar_lea.vmem %s1554_s9, 256  ;;  %p1556_p6 = scmp.lt.s32.totalorder %s1793_s7, %s1554_s9 }
  0x58   : > { %p1551_p13 = pnand %p1549_p11, %p1535_p3  ;;  %p1557_p10 = scmp.lt.s32.totalorder %s1555_s10, %s1548_s20 }
  0x5a   : > { %p1552_p2 = pneg %p1551_p13  ;;  %p1558_p12 = por %p1557_p10, %p1556_p6 }
  0x5c   : > { %p1559_p5 = pnand %p1558_p12, %p1552_p2 }
  0x5e   : > { %1562 = shalt.err (!%p1559_p5)
}
  0x5f   : > { %1428 = dma.hbm_to_vmem [thread:$0]  (!%p1789_p0), %s1787_s12, 128, %s1793_s7, %s129_s13  }
  0x60   : > { %p3223_p8 = scmp.ne.s32.totalorder %s3213_s29, 0 }
  0x62   : > { %149 = sbr.rel (%p3223_p8) target bundleno = 548 (0x224), region = 28 }
  0x69   : > { %s1823_s5 = sand.u32 1, %s1627_s23   ;;  %p3226_p3 = scmp.ne.s32.totalorder %s3210_s27, 0 }
  0x6a   : > { %3224 = sst [smem:[#allocation23_spill]] %s1823_s5  ;;  %s3064_s11 = sshll.u32 %s1823_s5, 3 }
  0x6b   : > { %s152_s4 = scalar_lea.sflag [#allocation5], %s1823_s5  ;;  %s1829_s14 = scalar_lea.vmem [#allocation4], %s3064_s11 }
  0x6c   : > { %3225 = sst [smem:[#allocation24_spill]] %s1829_s14 }
  0x6d   : > { %1610 = dma.done.wait (%p3226_p3), %s152_s4, 128  }
  0x6e   : > { %1612 = vsyncadd (%p3226_p3), %s152_s4, 4294967168  ;;  %p3227_p0 = scmp.eq.s32.totalorder %s1708_s0, 0 }
  0x70   : > { %1614 = dma.done.wait (%p3227_p0), [#allocation8], 512   ;;  %p3228_p4 = pmov %p3227_p0 }
  0x71   : > { %vm184_vm0 = vcmask 1043456   ;;  %v180_v0 = vld [vmem:[%s1829_s14] sm:$0xff]  ;;  %s1642_s27 = smov 2   ;;  %s1643_s29 = smov 3   ;;  %v220_v32 = vlaneseq }
  0x72   : > { %1616 = vsyncadd (%p3228_p4), [#allocation8], 4294966784  ;;  %v202_v1 = vsel %vm184_vm0, %v180_v0, -inf  ;;  %v182_v2 = vcombine.high %v180_v0, %v180_v0  ;;  %v185_v3 = vsel %vm184_vm0, %v180_v0, 0.0  ;;  %s1644_s12 = smov 1   ;;  %s1645_s7 = smov 127  }
  0x73   : > { %v203_v4 = vrot.slane %v202_v1, 4  ;;  %v186_v5 = vrot.slane %v185_v3, 4  ;;  %s1646_s8 = smov 126   ;;  %s1647_s13 = smov 125   ;;  %v228_v33 = vshrl.u32 %v220_v32, 7  ;;  %v1952_v42 = vand.u32 127, %v220_v32 }
  0x74   : > { %v209_v6 = vsel %vm184_vm0, %v182_v2, -inf  ;;  %v192_v7 = vsel %vm184_vm0, %v182_v2, 0.0  ;;  %s1872_s15 = sld [smem:[#allocation3 + $0x1]]  ;;  %s1874_s16 = sld [smem:[#allocation3]] }
  0x75   : > { %v204_v8 = vmax.f32 %v202_v1, %v203_v4  ;;  %v210_v9 = vrot.slane %v209_v6, 4  ;;  %v187_v10 = vadd.f32 %v186_v5, %v185_v3  ;;  %v193_v11 = vrot.slane %v192_v7, 4  ;;  %s1876_s17 = sld [smem:[#allocation3 + $0x8]]  ;;  %s1878_s18 = sld [smem:[#allocation3 + $0x2]] }
  0x76   : > { %s1880_s19 = sld [smem:[#allocation3 + $0x7]]  ;;  %s1882_s20 = sld [smem:[#allocation3 + $0x9]]  ;;  %v284_v34 = vld [vmem:[#allocation7 + $0x3] ss:$8 sm:$0x3]  ;;  %v1926_v35 = vsub.s32 0, %v228_v33 }
  0x77   : > { %v205_v12 = vrot.slane %v204_v8, 2  ;;  %v211_v13 = vmax.f32 %v209_v6, %v210_v9  ;;  %v188_v14 = vrot.slane %v187_v10, 2  ;;  %v194_v15 = vadd.f32 %v193_v11, %v192_v7  ;;  %s1884_s30 = sld [smem:[#allocation3 + $0xf]]  ;;  %s1886_s9 = sld [smem:[#allocation3 + $0x3]] }
  0x78   : > { %s1888_s10 = sld [smem:[#allocation3 + $0xa]]  ;;  %s1890_s4 = sld [smem:[#allocation3 + $0x31]]  ;;  %3251 = vst [vmem:[#allocation47_spill] sm:$0xff] %v1926_v35  ;;  %v1928_v36 = vsub.s32 1, %v228_v33  ;;  %v289_v39 = vrot.slane %v284_v34, %v1926_v35  ;;  %vm243_vm1 = vcmp.lt.s32.totalorder %v1952_v42, 2  ;;  %vm265_vm2 = vcmp.lt.s32.totalorder %v1952_v42, 1 }
  0x79   : > { %v206_v16 = vmax.f32 %v204_v8, %v205_v12  ;;  %v212_v17 = vrot.slane %v211_v13, 2  ;;  %v189_v20 = vadd.f32 %v188_v14, %v187_v10  ;;  %v195_v21 = vrot.slane %v194_v15, 2  ;;  %s1904_s11 = sld [smem:[#allocation3 + $0x10]]  ;;  %s1906_s1 = sld [smem:[#allocation3 + $0x4]] }
  0x7a   : > { %3229 = sst [smem:[#allocation25_spill]] %s1872_s15  ;;  %s1908_s2 = sld [smem:[#allocation3 + $0x3a]]  ;;  %3252 = vst [vmem:[#allocation48_spill] sm:$0xff] %v1928_v36  ;;  %v247_v37 = vld [vmem:[#allocation7 + $0x1] ss:$8 sm:$0x3]  ;;  %v293_v40 = vrot.slane %v284_v34, %v1928_v36  ;;  %v427_v50 = vstv %s1872_s15 }
  0x7b   : > { %v207_v18 = vrot.slane %v206_v16, 1  ;;  %v213_v19 = vmax.f32 %v211_v13, %v212_v17  ;;  %v190_v25 = vrot.slane %v189_v20, 1  ;;  %v196_v26 = vadd.f32 %v195_v21, %v194_v15  ;;  %3230 = sst [smem:[#allocation26_spill]] %s1874_s16  ;;  %s1910_s21 = sld [smem:[#allocation3 + $0x34]] }
  0x7c   : > { %3231 = sst [smem:[#allocation27_spill]] %s1876_s17  ;;  %s1912_s24 = sld [smem:[#allocation3 + $0x3b]]  ;;  %v269_v38 = vld [vmem:[#allocation7 + $0x2] ss:$8 sm:$0x3]  ;;  %v1955_v43 = vrot.slane %v247_v37, %v1926_v35  ;;  %v1962_v44 = vrot.slane %v247_v37, %v1928_v36  ;;  %v537_v56 = vstv %s1876_s17  ;;  %vm222_vm3 = vcmp.lt.s32.totalorder %v1952_v42, 3 }
  0x7d   : > { %v1840_v22 = vmax.f32 %v206_v16, %v207_v18  ;;  %v214_v23 = vrot.slane %v213_v19, 1  ;;  %v191_v27 = vadd.f32 %v190_v25, %v189_v20  ;;  %v197_v28 = vrot.slane %v196_v26, 1  ;;  %3232 = sst [smem:[#allocation28_spill]] %s1878_s18  ;;  %s1914_s23 = sld [smem:[#allocation3 + $0xb]] }
  0x7e   : > { %3233 = sst [smem:[#allocation29_spill]] %s1880_s19  ;;  %s1916_s6 = sld [smem:[#allocation3 + $0x40]]  ;;  %v225_v41 = vld [vmem:[#allocation7] ss:$8 sm:$0x3]  ;;  %v1965_v45 = vrot.slane %v269_v38, %v1926_v35  ;;  %v1978_v48 = vrot.slane %v269_v38, %v1928_v36  ;;  %v451_v51 = vstv %s1886_s9  ;;  %v561_v52 = vstv %s1888_s10 }
  0x7f   : > { %239 = vrot.lane.b32.xlu1 %v1840_v22, %s1642_s27  ;;  %216 = vrot.lane.b32.xlu0 %v1840_v22, %s1643_s29  ;;  %v1844_v24 = vmax.f32 %v213_v19, %v214_v23  ;;  %v1850_v29 = vmul.f32 0.25, %v191_v27  ;;  %v198_v30 = vadd.f32 %v197_v28, %v196_v26  ;;  %3234 = sst [smem:[#allocation30_spill]] %s1882_s20  ;;  %s1918_s25 = sld [smem:[#allocation3 + $0x35]]  ;;  %v1968_v46 = vmul.f32 %v289_v39, %v1840_v22  ;;  %v306_v49 = vld [vmem:[#allocation7 + $0x4] ss:$8 sm:$0x3] }
  0x80   : > { %3235 = sst [smem:[#allocation31_spill]] %s1884_s30  ;;  %s1922_s22 = sld [smem:[#allocation3 + $0x5]]  ;;  %v1988_v53 = vrot.slane %v225_v41, %v1926_v35  ;;  %v1991_v54 = vrot.slane %v225_v41, %v1928_v36  ;;  %v647_v60 = vstv %s1884_s30  ;;  %v328_v1 = vld [vmem:[#allocation7 + $0x5] ss:$8 sm:$0x3]  ;;  %v2034_v6 = vrot.slane %v306_v49, %v1926_v35 }
  0x81   : > { %v1854_v31 = vmul.f32 0.25, %v198_v30  ;;  %3236 = sst [smem:[#allocation32_spill]] %s1890_s4  ;;  %s1920_s28 = sld [smem:[#allocation3 + $0x3c]]  ;;  %v1973_v47 = vmul.f32 %v293_v40, %v1844_v24  ;;  %v2008_v61 = vmul.f32 %v451_v51, %v1968_v46  ;;  %v2014_v63 = vmul.f32 %v561_v52, %v1968_v46  ;;  %v350_v11 = vld [vmem:[#allocation7 + $0x6] ss:$8 sm:$0x3] }
  0x82   : > { %3243 = sst [smem:[#allocation39_spill]] %s1904_s11  ;;  %s1924_s3 = sld [smem:[#allocation3 + $0x11]]  ;;  %v2022_v2 = vmul.f32 %v289_v39, %v1850_v29  ;;  %v457_v7 = vstv %s1910_s21  ;;  %v567_v8 = vstv %s1912_s24  ;;  %v2046_v10 = vrot.slane %v306_v49, %v1928_v36 }
  0x83   : > { %261 = vrot.lane.b32.xlu0 %v1840_v22, %s1644_s12  ;;  %241 = vrot.lane.b32.xlu1 %v1844_v24, %s1642_s27  ;;  %3244 = sst [smem:[#allocation40_spill]] %s1906_s1  ;;  %s1930_s26 = sld [smem:[#allocation3 + $0x36]]  ;;  %v2011_v62 = vmul.f32 %v451_v51, %v1973_v47  ;;  %v2026_v4 = vmul.f32 %v293_v40, %v1854_v31  ;;  %v2039_v9 = vmul.f32 %v561_v52, %v1973_v47  ;;  %vm302_vm4 = vcmp.lt.s32.totalorder %v1952_v42, 127 }
  0x84   : > { %3245 = sst [smem:[#allocation41_spill]] %s1908_s2  ;;  %s1932_s14 = sld [smem:[#allocation3 + $0xc]]  ;;  %v2064_v19 = vmul.f32 %v457_v7, %v2022_v2  ;;  %v2078_v23 = vrot.slane %v328_v1, %v1926_v35  ;;  %v2112_v37 = vrot.slane %v350_v11, %v1928_v36  ;;  %vm324_vm5 = vcmp.lt.s32.totalorder %v1952_v42, 126 }
  0x85   : > { %3246 = sst [smem:[#allocation42_spill]] %s1914_s23  ;;  %s1934_s5 = sld [smem:[#allocation3 + $0x3d]]  ;;  %3273 = vst [vmem:[#allocation69_spill] sm:$0xff] %v2026_v4  ;;  %v2067_v20 = vmul.f32 %v457_v7, %v2026_v4  ;;  %v2104_v33 = vmul.f32 %v567_v8, %v2026_v4  ;;  %vm346_vm6 = vcmp.lt.s32.totalorder %v1952_v42, 125  ;;  %vm614_vm7 = vcmp.lt.s32.totalorder %v1952_v42, 32 }
  0x86   : > { %3247 = sst [smem:[#allocation43_spill]] %s1916_s6  ;;  %s1936_s0 = sld [smem:[#allocation3 + $0x41]]  ;;  %vm504_vm8 = vcmp.lt.s32.totalorder %v1952_v42, 48  ;;  %vm724_vm9 = vcmp.lt.s32.totalorder %v1952_v42, 16  ;;  %vm937_vm10 = vcmp.lt.s32.totalorder %v1952_v42, 112  ;;  %vm1047_vm11 = vcmp.lt.s32.totalorder %v1952_v42, 96 }
  0x87   : > { %263 = vrot.lane.b32.xlu1 %v1844_v24, %s1644_s12  ;;  %218 = vrot.lane.b32.xlu0 %v1844_v24, %s1643_s29  ;;  %3248 = sst [smem:[#allocation44_spill]] %s1918_s25  ;;  %s1940_s6 = sld [smem:[#allocation3 + $0x12]]  ;;  %vm1157_vm12 = vcmp.lt.s32.totalorder %v1952_v42, 80 }
  0x88   : > { %3249 = sst [smem:[#allocation45_spill]] %s1920_s28  ;;  %s1942_s28 = sld [smem:[#allocation3 + $0x1d]]  ;;  %v671_v18 = vstv %s1924_s3 }
  0x89   : > { %3250 = sst [smem:[#allocation46_spill]] %s1922_s22  ;;  %s1944_s22 = sld [smem:[#allocation3 + $0x6]]  ;;  %v2093_v30 = vmul.f32 %v671_v18, %v1968_v46  ;;  %v2123_v49 = vmul.f32 %v671_v18, %v1973_v47 }
  0x8a   : > { %3253 = sst [smem:[#allocation49_spill]] %s1930_s26  ;;  %s1946_s26 = sld [smem:[#allocation3 + $0xd]] }
  0x8b   : > { %300 = vrot.lane.b32.xlu1 %v1844_v24, %s1645_s7  ;;  %364 = vrot.lane.b32.xlu0 %v1850_v29, %s1643_s29  ;;  %3254 = sst [smem:[#allocation50_spill]] %s1932_s14  ;;  %s1948_s14 = sld [smem:[#allocation3 + $0x42]] }
  0x8c   : > { %3255 = sst [smem:[#allocation51_spill]] %s1934_s5  ;;  %s1950_s5 = sld [smem:[#allocation3 + $0x43]] }
  0x8d   : > { %3256 = sst [smem:[#allocation52_spill]] %s1936_s0  ;;  %s2003_s9 = sld [smem:[#allocation3 + $0x14]] }
  0x8e   : > { %3257 = sst [smem:[#allocation53_spill]] %s1940_s6  ;;  %s1957_s6 = sld [smem:[#allocation3 + $0x1c]] }
  0x8f   : > { %372 = vrot.lane.b32.xlu0 %v1850_v29, %s1642_s27  ;;  %366 = vrot.lane.b32.xlu1 %v1854_v31, %s1643_s29  ;;  %s1894_s29 = sld [smem:[#allocation3 + $0x32]]  ;;  %3258 = sst [smem:[#allocation54_spill]] %s1942_s28 }
  0x90   : > { %3259 = sst [smem:[#allocation55_spill]] %s1944_s22  ;;  %s1959_s28 = sld [smem:[#allocation3 + $0x1e]] }
  0x91   : > { %3260 = sst [smem:[#allocation56_spill]] %s1946_s26  ;;  %s1985_s26 = sld [smem:[#allocation3 + $0x44]]  ;;  %v677_v34 = vstv %s1948_s14 }
  0x92   : > { %3261 = sst [smem:[#allocation57_spill]] %s1950_s5  ;;  %s1970_s5 = sld [smem:[#allocation3 + $0x37]]  ;;  %v2169_v7 = vmul.f32 %v677_v34, %v2026_v4 }
  0x93   : > { %380 = vrot.lane.b32.xlu0 %v1850_v29, %s1644_s12  ;;  %374 = vrot.lane.b32.xlu1 %v1854_v31, %s1642_s27  ;;  %s1892_s27 = sld [smem:[#allocation3 + $0xe]]  ;;  %3269 = sst [smem:[#allocation65_spill]] %s2003_s9 }
  0x94   : > { %3262 = sst [smem:[#allocation58_spill]] %s1957_s6  ;;  %s1975_s6 = sld [smem:[#allocation3 + $0x3e]] }
  0x95   : > { %3238 = sst [smem:[#allocation34_spill]] %s1894_s29  ;;  %s2005_s10 = sld [smem:[#allocation3 + $0x4e]] }
  0x96   : > { %3263 = sst [smem:[#allocation59_spill]] %s1959_s28  ;;  %s1983_s28 = sld [smem:[#allocation3 + $0x13]] }
  0x97   : > { %298 = vrot.lane.b32.xlu0 %v1840_v22, %s1645_s7  ;;  %382 = vrot.lane.b32.xlu1 %v1854_v31, %s1644_s12  ;;  %s1896_s12 = sld [smem:[#allocation3 + $0x38]]  ;;  %3267 = sst [smem:[#allocation63_spill]] %s1985_s26 }
  0x98   : > { %3264 = sst [smem:[#allocation60_spill]] %s1970_s5  ;;  %s2017_s18 = sld [smem:[#allocation3 + $0x45]] }
  0x99   : > { %3237 = sst [smem:[#allocation33_spill]] %s1892_s27  ;;  %s1997_s5 = sld [smem:[#allocation3 + $0x1f]] }
  0x9a   : > { %3265 = sst [smem:[#allocation61_spill]] %s1975_s6  ;;  %s1995_s6 = sld [smem:[#allocation3 + $0x4d]] }
  0x9b   : > { %390 = vrot.lane.b32.xlu0 %v1850_v29, %s1645_s7  ;;  %392 = vrot.lane.b32.xlu1 %v1854_v31, %s1645_s7  ;;  %s1898_s7 = sld [smem:[#allocation3 + $0x39]]  ;;  %3270 = sst [smem:[#allocation66_spill]] %s2005_s10 }
  0x9c   : > { %3266 = sst [smem:[#allocation62_spill]] %s1983_s28  ;;  %s2019_s20 = sld [smem:[#allocation3 + $0x23]] }
  0x9d   : > { %3239 = sst [smem:[#allocation35_spill]] %s1896_s12  ;;  %s2029_s19 = sld [smem:[#allocation3 + $0x4f]] }
  0x9e   : > { %3271 = sst [smem:[#allocation67_spill]] %s2017_s18  ;;  %s2031_s27 = sld [smem:[#allocation3 + $0x24]] }
  0x9f   : > { %320 = vrot.lane.b32.xlu0 %v1840_v22, %s1646_s8  ;;  %322 = vrot.lane.b32.xlu1 %v1844_v24, %s1646_s8  ;;  %s2041_s4 = sld [smem:[#allocation3 + $0x50]]  ;;  %s2051_s12 = sld [smem:[#allocation3 + $0x51]]  ;;  %v884_v52 = vstv %s1997_s5 }
  0xa0   : > { %3268 = sst [smem:[#allocation64_spill]] %s1995_s6  ;;  %s2043_s16 = sld [smem:[#allocation3 + $0x20]]  ;;  %v2153_v38 = vmul.f32 %v884_v52, %v1968_v46  ;;  %v2172_v27 = vmul.f32 %v884_v52, %v1973_v47 }
  0xa1   : > { %3240 = sst [smem:[#allocation36_spill]] %s1898_s7  ;;  %s2053_s21 = sld [smem:[#allocation3 + $0x25]] }
  0xa2   : > { %3272 = sst [smem:[#allocation68_spill]] %s2019_s20  ;;  %s2059_s17 = sld [smem:[#allocation3 + $0x21]] }
  0xa3   : > { %398 = vrot.lane.b32.xlu0 %v1850_v29, %s1646_s8  ;;  %400 = vrot.lane.b32.xlu1 %v1854_v31, %s1646_s8  ;;  %s1900_s8 = sld [smem:[#allocation3 + $0x3f]]  ;;  %3274 = sst [smem:[#allocation70_spill]] %s2029_s19 }
  0xa4   : > { %3275 = sst [smem:[#allocation71_spill]] %s2031_s27  ;;  %s2075_s3 = sld [smem:[#allocation3 + $0x53]] }
  0xa5   : > { %s2085_s29 = sld [smem:[#allocation3 + $0x54]]  ;;  %s2107_s24 = sld [smem:[#allocation3 + $0x55]] }
  0xa6   : > { %3276 = sst [smem:[#allocation72_spill]] %s2043_s16  ;;  %s2109_s30 = sld [smem:[#allocation3 + $0x2c]] }
  0xa7   : > { %342 = vrot.lane.b32.xlu0 %v1840_v22, %s1647_s13  ;;  %344 = vrot.lane.b32.xlu1 %v1844_v24, %s1647_s13  ;;  %3277 = sst [smem:[#allocation73_spill]] %s2053_s21  ;;  %s2061_s16 = sld [smem:[#allocation3 + $0x52]]  ;;  %v2071_v22 = vmul.f32 %v567_v8, %v2022_v2  ;;  %v2081_v24 = vrot.slane %v328_v1, %v1928_v36  ;;  %v2134_v8 = vmul.f32 %v677_v34, %v2022_v2 }
  0xa8   : > { %3280 = sst [smem:[#allocation74_spill]] %s2059_s17  ;;  %s2117_s1 = sld [smem:[#allocation3 + $0x56]] }
  0xa9   : > { %3241 = sst [smem:[#allocation37_spill]] %s1900_s8  ;;  %s2087_s8 = sld [smem:[#allocation3 + $0x26]] }
  0xaa   : > { %3285 = sst [smem:[#allocation77_spill]] %s2075_s3  ;;  %s2095_s3 = sld [smem:[#allocation3 + $0x2a]] }
  0xab   : > { %406 = vrot.lane.b32.xlu0 %v1850_v29, %s1647_s13  ;;  %408 = vrot.lane.b32.xlu1 %v1854_v31, %s1647_s13  ;;  %s1902_s13 = sld [smem:[#allocation3 + $0x33]]  ;;  %3287 = sst [smem:[#allocation78_spill]] %s2085_s29  ;;  %v2100_v31 = vrot.slane %v350_v11, %v1926_v35  ;;  %v890_v29 = vstv %s2041_s4 }
  0xac   : > { %3294 = sst [smem:[#allocation80_spill]] %s2109_s30  ;;  %s2119_s29 = sld [smem:[#allocation3 + $0x57]]  ;;  %v2189_v52 = vmul.f32 %v890_v29, %v2022_v2  ;;  %v2194_v25 = vmul.f32 %v890_v29, %v2026_v4 }
  0xad   : > { %3282 = sst [smem:[#allocation75_spill]] %s2061_s16  ;;  %s2097_s16 = sld [smem:[#allocation3 + $0x2b]] }
  0xae   : > { %3298 = sst [smem:[#allocation81_spill]] %s2117_s1  ;;  %s2127_s30 = sld [smem:[#allocation3 + $0x27]]  ;;  %3310 = vst [vmem:[#allocation83_spill] sm:$0xff] %v2194_v25 }
  0xaf   : > { %s2129_s2 = sld [smem:[#allocation3 + $0x58]]  ;;  %s2139_s0 = sld [smem:[#allocation3 + $0x59]]  ;;  %v994_v34 = vstv %s2087_s8 }
  0xb0   : > { %3290 = sst [smem:[#allocation79_spill]] %s2095_s3  ;;  %s2137_s11 = sld [smem:[#allocation3 + $0x28]]  ;;  %v2210_v29 = vmul.f32 %v994_v34, %v1968_v46  ;;  %v2223_v41 = vmul.f32 %v994_v34, %v1973_v47 }
  0xb1   : > { %3242 = sst [smem:[#allocation38_spill]] %s1902_s13  ;;  %s2073_s13 = sld [smem:[#allocation3 + $0x22]] }
  0xb2   : > { %s2145_s5 = sld [smem:[#allocation3 + $0x29]]  ;;  %s2147_s15 = sld [smem:[#allocation3 + $0x5a]]  ;;  %v1000_v26 = vstv %s2119_s29  ;;  %3315 = vst [vmem:[#allocation84_spill] sm:$0xff] %v2210_v29  ;;  %3318 = vst [vmem:[#allocation87_spill] sm:$0xff] %v2223_v41 }
  0xb3   : > { %s2155_s25 = sld [smem:[#allocation3 + $0x5b]]  ;;  %s2157_s23 = sld [smem:[#allocation3 + $0x2d]]  ;;  %v2231_v21 = vmul.f32 %v1000_v26, %v2022_v2  ;;  %v2243_v13 = vmul.f32 %v1000_v26, %v2026_v4 }
  0xb4   : > { %s2165_s26 = sld [smem:[#allocation3 + $0x15]]  ;;  %s2175_s9 = sld [smem:[#allocation3 + $0x5c]] }
  0xb5   : > { %s2177_s4 = sld [smem:[#allocation3 + $0x16]]  ;;  %s3306_s20 = sld [smem:[#allocation77_spill]]  ;;  %3321 = vst [vmem:[#allocation90_spill] sm:$0xff] %v2231_v21  ;;  %3324 = vst [vmem:[#allocation93_spill] sm:$0xff] %v2243_v13 }
  0xb6   : > { %s3307_s18 = sld [smem:[#allocation78_spill]]  ;;  %s2184_s7 = sld [smem:[#allocation3 + $0x5d]] }
  0xb7   : > { %3284 = sst [smem:[#allocation76_spill]] %s2073_s13  ;;  %s3291_s13 = sld [smem:[#allocation54_spill]] }
  0xb8   : > { %3292 = sst [smem:[#allocation54_spill]] %s2097_s16  ;;  %s2163_s16 = sld [smem:[#allocation3 + $0x5e]] }
  0xb9   : > { %s3304_s10 = sld [smem:[#allocation76_spill]]  ;;  %s2196_s3 = sld [smem:[#allocation3 + $0x5f]]  ;;  %v1104_v18 = vstv %s2157_s23 }
  0xba   : > { %3302 = sst [smem:[#allocation82_spill]] %s2165_s26  ;;  %s2186_s6 = sld [smem:[#allocation3 + $0x2e]]  ;;  %v2252_v5 = vmul.f32 %v1104_v18, %v1968_v46  ;;  %v2255_v16 = vmul.f32 %v1104_v18, %v1973_v47 }
  0xbb   : > { %3305 = sst [smem:[#allocation76_spill]] %s2177_s4  ;;  %s2198_s21 = sld [smem:[#allocation3 + $0x2f]] }
  0xbc   : > { %s3313_s8 = sld [smem:[#allocation80_spill]]  ;;  %s2204_s22 = sld [smem:[#allocation3 + $0x60]]  ;;  %3325 = vst [vmem:[#allocation94_spill] sm:$0xff] %v2252_v5  ;;  %3326 = vst [vmem:[#allocation95_spill] sm:$0xff] %v2255_v16 }
  0xbd   : > { %v860_v51 = vstv %s3291_s13  ;;  %s2206_s19 = sld [smem:[#allocation3 + $0x18]]  ;;  %s2216_s28 = sld [smem:[#allocation3 + $0x49]] }
  0xbe   : > { %s2214_s17 = sld [smem:[#allocation3 + $0x30]]  ;;  %s2226_s29 = sld [smem:[#allocation3 + $0x61]]  ;;  %v1110_v12 = vstv %s2163_s16 }
  0xbf   : > { %3311 = sst [smem:[#allocation77_spill]] %s2196_s3  ;;  %s2236_s14 = sld [smem:[#allocation3 + $0x46]]  ;;  %v2260_v3 = vmul.f32 %v1110_v12, %v2022_v2  ;;  %v2267_v17 = vmul.f32 %v1110_v12, %v2026_v4 }
  0xc0   : > { %s2228_s27 = sld [smem:[#allocation3 + $0x17]]  ;;  %s3339_s23 = sld [smem:[#allocation29_spill]] }
  0xc1   : > { %3312 = sst [smem:[#allocation78_spill]] %s2198_s21  ;;  %s2238_s1 = sld [smem:[#allocation3 + $0x47]]  ;;  %3327 = vst [vmem:[#allocation96_spill] sm:$0xff] %v2260_v3  ;;  %3328 = vst [vmem:[#allocation97_spill] sm:$0xff] %v2267_v17 }
  0xc2   : > { %3314 = sst [smem:[#allocation80_spill]] %s2204_s22  ;;  %s3341_s4 = sld [smem:[#allocation30_spill]] }
  0xc3   : > { %3317 = sst [smem:[#allocation86_spill]] %s2216_s28  ;;  %v781_v18 = vstv %s2206_s19  ;;  %v3173_v26 = vstv %s2216_s28  ;;  %s3345_s26 = sld [smem:[#allocation39_spill]] }
  0xc4   : > { %3316 = sst [smem:[#allocation85_spill]] %s2214_s17  ;;  %v2287_v57 = vmul.f32 %v781_v18, %v1968_v46  ;;  %v2290_v55 = vmul.f32 %v781_v18, %v1973_v47  ;;  %v2304_v46 = vmul.f32 %v3173_v26, %v2022_v2  ;;  %s3359_s13 = sld [smem:[#allocation35_spill]] }
  0xc5   : > { %3319 = sst [smem:[#allocation88_spill]] %s2226_s29  ;;  %s3369_s19 = sld [smem:[#allocation36_spill]] }
  0xc6   : > { %3320 = sst [smem:[#allocation89_spill]] %s2228_s27  ;;  %3333 = vst [vmem:[#allocation100_spill] sm:$0xff] %v2287_v57  ;;  %3334 = vst [vmem:[#allocation101_spill] sm:$0xff] %v2290_v55  ;;  %s3336_s27 = sld [smem:[#allocation26_spill]]  ;;  %v3349_v57 = vstv %s3339_s23 }
  0xc7   : > { %3322 = sst [smem:[#allocation91_spill]] %s2236_s14  ;;  %3337 = vst [vmem:[#allocation102_spill] sm:$0xff] %v2304_v46  ;;  %s3343_s14 = sld [smem:[#allocation33_spill]]  ;;  %v3351_v4 = vmov %v3349_v57 }
  0xc8   : > { %3323 = sst [smem:[#allocation92_spill]] %s2238_s1  ;;  %s3338_s1 = sld [smem:[#allocation28_spill]]  ;;  %v3350_v16 = vstv %s3341_s4 }
  0xc9   : > { %s3365_s4 = sld [smem:[#allocation59_spill]]  ;;  %s3367_s16 = sld [smem:[#allocation34_spill]] }
  0xca   : > { %s3378_s23 = sld [smem:[#allocation38_spill]]  ;;  %s3422_s28 = sld [smem:[#allocation61_spill]] }
  0xcb   : > { %s3425_s29 = sld [smem:[#allocation63_spill]]  ;;  %s3426_s17 = sld [smem:[#allocation65_spill]] }
  0xcc   : > { %s2632_s22 = sld [smem:[#allocation3 + $0x48]]  ;;  %s1648_s21 = smov 48  }
  0xcd   : > { %v3353_v13 = vstv %s3343_s14  ;;  %s3362_s14 = sld [smem:[#allocation64_spill]]  ;;  %s3441_s3 = sld [smem:[#allocation72_spill]] }
  0xce   : > { %v3356_v21 = vmov %v3353_v13 }
  0xf1   : > { %v240_v34 = vpop.permute.xlu1 %239  ;;  %v217_v1 = vpop.permute.xlu0 %216 }
  0xf5   : > { %v262_v11 = vpop.permute.xlu0 %261  ;;  %v242_v14 = vpop.permute.xlu1 %241 }
  0xf6   : > { %v244_v15 = vsel %vm243_vm1, %v240_v34, %v242_v14  ;;  %v245_v28 = vsel %vm243_vm1, %v242_v14, %v240_v34 }
  0xf7   : > { %v2277_v0 = vmul.f32 %v1955_v43, %v245_v28  ;;  %v2280_v40 = vmul.f32 %v1962_v44, %v244_v15 }
  0xf9   : > { %3331 = vst [vmem:[#allocation98_spill] sm:$0xff] %v2277_v0  ;;  %3332 = vst [vmem:[#allocation99_spill] sm:$0xff] %v2280_v40  ;;  %v264_v14 = vpop.permute.xlu1 %263  ;;  %v219_v34 = vpop.permute.xlu0 %218  ;;  %v428_v15 = vmul.f32 %v427_v50, %v2277_v0  ;;  %v429_v28 = vmul.f32 %v427_v50, %v2280_v40  ;;  %v538_v32 = vmul.f32 %v537_v56, %v2277_v0 }
  0xfa   : > { %v266_v47 = vsel %vm265_vm2, %v262_v11, %v264_v14  ;;  %v267_v18 = vsel %vm265_vm2, %v264_v14, %v262_v11  ;;  %v223_v50 = vsel %vm222_vm3, %v217_v1, %v219_v34  ;;  %v224_v58 = vsel %vm222_vm3, %v219_v34, %v217_v1 }
  0xfb   : > { %v2315_v2 = vmul.f32 %v1965_v45, %v267_v18  ;;  %v2318_v59 = vmul.f32 %v1978_v48, %v266_v47  ;;  %v2321_v26 = vmul.f32 %v1988_v53, %v224_v58  ;;  %v2324_v11 = vmul.f32 %v1991_v54, %v223_v50 }
  0xfc   : > { %v539_v14 = vmul.f32 %v537_v56, %v2280_v40  ;;  %v648_v1 = vmul.f32 %v647_v60, %v2277_v0  ;;  %v649_v34 = vmul.f32 %v647_v60, %v2280_v40  ;;  %v861_v47 = vmul.f32 %v860_v51, %v2277_v0 }
  0xfd   : > { %3340 = vst [vmem:[#allocation103_spill] sm:$0xff] %v2315_v2  ;;  %3342 = vst [vmem:[#allocation104_spill] sm:$0xff] %v2324_v11  ;;  %v2338_v18 = vpop.permute.xlu1 %300  ;;  %v365_v58 = vpop.permute.xlu0 %364  ;;  %v3344_v50 = vstv %s3336_s27  ;;  %v3346_v56 = vstv %s3338_s1  ;;  %v2352_v60 = vmul.f32 %v860_v51, %v2280_v40  ;;  %v526_v17 = vmul.f32 %v3349_v57, %v2321_v26  ;;  %s3355_s1 = sld [smem:[#allocation58_spill]] }
  0xfe   : > { %v416_v12 = vmul.f32 %v3344_v50, %v2321_v26  ;;  %v440_v39 = vmul.f32 %v3346_v56, %v2315_v2  ;;  %v3347_v36 = vmov %v3344_v50  ;;  %v3348_v46 = vmov %v3346_v56  ;;  %s3358_s27 = sld [smem:[#allocation32_spill]] }
  0xff   : > { %v417_v35 = vmul.f32 %v3347_v36, %v2324_v11  ;;  %v441_v55 = vmul.f32 %v3348_v46, %v2318_v59  ;;  %v550_v50 = vmul.f32 %v3350_v16, %v2315_v2  ;;  %v527_v56 = vmul.f32 %v3351_v4, %v2324_v11 }
 0x100   : > { %v430_v36 = vadd.f32 %v428_v15, %v416_v12  ;;  %v3352_v51 = vmov %v3350_v16  ;;  %v636_v46 = vmul.f32 %v3353_v13, %v2321_v26  ;;  %v540_v41 = vadd.f32 %v538_v32, %v526_v17 }
 0x101   : > { %v431_v3 = vadd.f32 %v429_v28, %v417_v35  ;;  %v551_v5 = vmul.f32 %v3352_v51, %v2318_v59  ;;  %v541_v40 = vadd.f32 %v539_v14, %v527_v56  ;;  %v3354_v57 = vstv %s3345_s26  ;;  %v373_v4 = vpop.permute.xlu0 %372  ;;  %v367_v25 = vpop.permute.xlu1 %366  ;;  %s3360_s26 = sld [smem:[#allocation37_spill]] }
 0x102   : > { %v660_v16 = vmul.f32 %v3354_v57, %v2315_v2  ;;  %v637_v29 = vmul.f32 %v3356_v21, %v2324_v11  ;;  %v442_v0 = vadd.f32 %v440_v39, %v430_v36  ;;  %v650_v35 = vadd.f32 %v648_v1, %v636_v46 }
 0x103   : > { %v443_v12 = vadd.f32 %v441_v55, %v431_v3  ;;  %v3357_v15 = vmov %v3354_v57  ;;  %v368_v13 = vsel %vm222_vm3, %v365_v58, %v367_v25  ;;  %v369_v17 = vsel %vm222_vm3, %v367_v25, %v365_v58 }
 0x104   : > { %v661_v28 = vmul.f32 %v3357_v15, %v2318_v59  ;;  %v552_v32 = vadd.f32 %v550_v50, %v540_v41  ;;  %v553_v14 = vadd.f32 %v551_v5, %v541_v40  ;;  %v2387_v21 = vmul.f32 %v369_v17, %v1988_v53 }
 0x105   : > { %v2390_v55 = vmul.f32 %v368_v13, %v1991_v54  ;;  %v454_v3 = vadd.f32 %v2008_v61, %v442_v0  ;;  %v3361_v39 = vstv %s3355_s1  ;;  %v455_v56 = vadd.f32 %v2011_v62, %v443_v12  ;;  %v381_v53 = vpop.permute.xlu0 %380  ;;  %v375_v40 = vpop.permute.xlu1 %374 }
 0x106   : > { %v849_v1 = vmul.f32 %v3361_v39, %v2321_v26  ;;  %v2398_v36 = vadd.f32 %v2014_v63, %v552_v32  ;;  %v662_v25 = vadd.f32 %v660_v16, %v650_v35  ;;  %v651_v5 = vadd.f32 %v649_v34, %v637_v29 }
 0x107   : > { %v3363_v54 = vstv %s3358_s27  ;;  %v3366_v0 = vstv %s3359_s13  ;;  %v2410_v62 = vadd.f32 %v2039_v9, %v553_v14  ;;  %v376_v63 = vsel %vm243_vm1, %v373_v4, %v375_v40  ;;  %s3379_s27 = sld [smem:[#allocation40_spill]]  ;;  %s3380_s13 = sld [smem:[#allocation41_spill]] }
 0x108   : > { %v422_v41 = vmul.f32 %v3363_v54, %v2387_v21  ;;  %v3364_v58 = vmov %v3363_v54  ;;  %v532_v50 = vmul.f32 %v3366_v0, %v2387_v21  ;;  %v377_v29 = vsel %vm243_vm1, %v375_v40, %v373_v4 }
 0x109   : > { %v423_v61 = vmul.f32 %v3364_v58, %v2390_v55  ;;  %v3368_v34 = vmov %v3366_v0  ;;  %v3370_v46 = vstv %s3360_s26  ;;  %v2425_v9 = vmul.f32 %v377_v29, %v1955_v43  ;;  %v299_v14 = vpop.permute.xlu0 %298  ;;  %v383_v39 = vpop.permute.xlu1 %382  ;;  %s3382_s26 = sld [smem:[#allocation42_spill]] }
 0x10a   : > { %v533_v51 = vmul.f32 %v3368_v34, %v2390_v55  ;;  %v2422_v57 = vmul.f32 %v3370_v46, %v2387_v21  ;;  %v2428_v16 = vmul.f32 %v376_v63, %v1962_v44  ;;  %v2432_v12 = vadd.f32 %v2093_v30, %v662_v25 }
 0x10b   : > { %v3371_v4 = vmov %v3370_v46  ;;  %v2439_v15 = vadd.f32 %v661_v28, %v651_v5  ;;  %v3372_v13 = vstv %s3362_s14  ;;  %v2446_v43 = vadd.f32 %v861_v47, %v849_v1 }
 0x10c   : > { %v2437_v35 = vmul.f32 %v3371_v4, %v2390_v55  ;;  %v2444_v17 = vmul.f32 %v3372_v13, %v2387_v21  ;;  %v3373_v44 = vstv %s3365_s4  ;;  %v3374_v30 = vstv %s3367_s16  ;;  %s3389_s16 = sld [smem:[#allocation45_spill]] }
 0x10d   : > { %v2451_v32 = vmul.f32 %v3373_v44, %v2315_v2  ;;  %v434_v25 = vmul.f32 %v3374_v30, %v2425_v9  ;;  %v3375_v40 = vmov %v3374_v30  ;;  %v3376_v5 = vstv %s3369_s19  ;;  %s3394_s19 = sld [smem:[#allocation46_spill]] }
 0x10e   : > { %v435_v28 = vmul.f32 %v3375_v40, %v2428_v16  ;;  %v544_v54 = vmul.f32 %v3376_v5, %v2425_v9  ;;  %v3377_v58 = vmov %v3376_v5  ;;  %v303_v1 = vsel %vm302_vm4, %v299_v14, %v2338_v18  ;;  %v393_v40 = vpop.permute.xlu1 %392 }
 0x10f   : > { %v545_v47 = vmul.f32 %v3377_v58, %v2428_v16  ;;  %v304_v0 = vsel %vm302_vm4, %v2338_v18, %v299_v14  ;;  %v384_v63 = vsel %vm265_vm2, %v381_v53, %v383_v39  ;;  %v385_v29 = vsel %vm265_vm2, %v383_v39, %v381_v53  ;;  %v391_v39 = vpop.permute.xlu0 %390 }
 0x110   : > { %v2476_v34 = vmul.f32 %v2034_v6, %v303_v1  ;;  %v2479_v46 = vmul.f32 %v2046_v10, %v304_v0  ;;  %v2482_v4 = vmul.f32 %v385_v29, %v1965_v45  ;;  %v2485_v13 = vmul.f32 %v384_v63, %v1978_v48 }
 0x111   : > { %v436_v18 = vadd.f32 %v434_v25, %v422_v41  ;;  %v437_v44 = vadd.f32 %v435_v28, %v423_v61  ;;  %v546_v14 = vadd.f32 %v544_v54, %v532_v50  ;;  %v3381_v30 = vstv %s3355_s1  ;;  %s3387_s1 = sld [smem:[#allocation44_spill]] }
 0x112   : > { %v2490_v53 = vmul.f32 %v3381_v30, %v2324_v11  ;;  %v3383_v5 = vstv %s3378_s23  ;;  %v3384_v1 = vstv %s3379_s27  ;;  %v394_v50 = vsel %vm302_vm4, %v391_v39, %v393_v40  ;;  %v323_v2 = vpop.permute.xlu1 %322  ;;  %s3395_s23 = sld [smem:[#allocation50_spill]]  ;;  %s3399_s27 = sld [smem:[#allocation43_spill]] }
 0x113   : > { %v446_v58 = vmul.f32 %v3383_v5, %v2482_v4  ;;  %v464_v45 = vmul.f32 %v3384_v1, %v2476_v34  ;;  %v3385_v0 = vmov %v3383_v5  ;;  %v3386_v41 = vmov %v3384_v1 }
 0x114   : > { %v447_v48 = vmul.f32 %v3385_v0, %v2485_v13  ;;  %v465_v61 = vmul.f32 %v3386_v41, %v2479_v46  ;;  %v395_v25 = vsel %vm302_vm4, %v393_v40, %v391_v39  ;;  %v3388_v28 = vstv %s3380_s13 }
 0x115   : > { %v556_v54 = vmul.f32 %v3388_v28, %v2482_v4  ;;  %v547_v63 = vadd.f32 %v545_v47, %v533_v51  ;;  %v2512_v29 = vmul.f32 %v394_v50, %v2034_v6  ;;  %v2515_v30 = vmul.f32 %v395_v25, %v2046_v10  ;;  %v321_v28 = vpop.permute.xlu0 %320 }
 0x116   : > { %v448_v5 = vadd.f32 %v446_v58, %v436_v18  ;;  %v3390_v1 = vstv %s3382_s26  ;;  %v466_v41 = vadd.f32 %v464_v45, %v454_v3  ;;  %v449_v39 = vadd.f32 %v447_v48, %v437_v44  ;;  %s3403_s26 = sld [smem:[#allocation51_spill]] }
 0x117   : > { %v574_v0 = vmul.f32 %v3390_v1, %v2476_v34  ;;  %v467_v40 = vadd.f32 %v465_v61, %v455_v56  ;;  %v558_v11 = vadd.f32 %v556_v54, %v546_v14  ;;  %v3391_v51 = vstv %s3387_s1  ;;  %s3407_s1 = sld [smem:[#allocation52_spill]] }
 0x118   : > { %v460_v6 = vadd.f32 %v2064_v19, %v448_v5  ;;  %v470_v10 = vmul.f32 %v3391_v51, %v2512_v29  ;;  %v3392_v47 = vmov %v3391_v51  ;;  %v3393_v18 = vstv %s3389_s16 }
 0x119   : > { %v471_v50 = vmul.f32 %v3392_v47, %v2515_v30  ;;  %v580_v58 = vmul.f32 %v3393_v18, %v2512_v29  ;;  %v325_v3 = vsel %vm324_vm5, %v321_v28, %v323_v2  ;;  %v326_v56 = vsel %vm324_vm5, %v323_v2, %v321_v28 }
 0x11a   : > { %v461_v19 = vadd.f32 %v2067_v20, %v449_v39  ;;  %v570_v44 = vadd.f32 %v2071_v22, %v558_v11  ;;  %v2538_v14 = vmul.f32 %v2078_v23, %v325_v3  ;;  %v2541_v45 = vmul.f32 %v2081_v24, %v326_v56  ;;  %v399_v22 = vpop.permute.xlu0 %398  ;;  %v401_v11 = vpop.permute.xlu1 %400 }
 0x11b   : > { %v576_v48 = vadd.f32 %v574_v0, %v2398_v36  ;;  %v3396_v61 = vstv %s3380_s13  ;;  %v472_v54 = vadd.f32 %v470_v10, %v460_v6  ;;  %v3397_v20 = vmov %v3390_v1  ;;  %s3402_s13 = sld [smem:[#allocation49_spill]] }
 0x11c   : > { %v557_v25 = vmul.f32 %v3396_v61, %v2485_v13  ;;  %v473_v5 = vadd.f32 %v471_v50, %v461_v19  ;;  %v582_v2 = vadd.f32 %v580_v58, %v570_v44  ;;  %v575_v1 = vmul.f32 %v3397_v20, %v2479_v46 }
 0x11d   : > { %v3398_v39 = vstv %s3394_s19  ;;  %v3401_v36 = vstv %s3395_s23  ;;  %v402_v6 = vsel %vm324_vm5, %v399_v22, %v401_v11  ;;  %v403_v10 = vsel %vm324_vm5, %v401_v11, %v399_v22  ;;  %s3413_s19 = sld [smem:[#allocation55_spill]]  ;;  %s3414_s23 = sld [smem:[#allocation56_spill]] }
 0x11e   : > { %v476_v28 = vmul.f32 %v3398_v39, %v2538_v14  ;;  %v3400_v51 = vmov %v3398_v39  ;;  %v586_v0 = vmul.f32 %v3401_v36, %v2538_v14  ;;  %v559_v18 = vadd.f32 %v557_v25, %v547_v63 }
 0x11f   : > { %v477_v47 = vmul.f32 %v3400_v51, %v2541_v45  ;;  %v3404_v50 = vstv %s3389_s16  ;;  %v3405_v3 = vmov %v3401_v36  ;;  %v2570_v19 = vmul.f32 %v402_v6, %v2078_v23  ;;  %v343_v51 = vpop.permute.xlu0 %342  ;;  %v345_v36 = vpop.permute.xlu1 %344  ;;  %s3409_s16 = sld [smem:[#allocation53_spill]] }
 0x120   : > { %v581_v58 = vmul.f32 %v3404_v50, %v2515_v30  ;;  %v587_v56 = vmul.f32 %v3405_v3, %v2541_v45  ;;  %v2573_v63 = vmul.f32 %v403_v10, %v2081_v24  ;;  %v478_v44 = vadd.f32 %v476_v28, %v466_v41 }
 0x121   : > { %v577_v61 = vadd.f32 %v575_v1, %v2410_v62  ;;  %v479_v25 = vadd.f32 %v477_v47, %v467_v40  ;;  %v588_v20 = vadd.f32 %v586_v0, %v576_v48  ;;  %v571_v22 = vadd.f32 %v2104_v33, %v559_v18 }
 0x122   : > { %v3406_v11 = vstv %s3399_s27  ;;  %v3408_v50 = vstv %s3402_s13  ;;  %v3411_v41 = vstv %s3403_s26  ;;  %v347_v48 = vsel %vm346_vm6, %v343_v51, %v345_v36  ;;  %s3419_s13 = sld [smem:[#allocation57_spill]]  ;;  %s3421_s26 = sld [smem:[#allocation60_spill]] }
 0x123   : > { %v654_v39 = vmul.f32 %v3406_v11, %v2425_v9  ;;  %v482_v23 = vmul.f32 %v3408_v50, %v2570_v19  ;;  %v3410_v24 = vmov %v3408_v50  ;;  %v592_v62 = vmul.f32 %v3411_v41, %v2570_v19 }
 0x124   : > { %v483_v6 = vmul.f32 %v3410_v24, %v2573_v63  ;;  %v3412_v40 = vmov %v3411_v41  ;;  %v348_v1 = vsel %vm346_vm6, %v345_v36, %v343_v51  ;;  %v583_v28 = vadd.f32 %v581_v58, %v571_v22  ;;  %v407_v58 = vpop.permute.xlu0 %406 }
 0x125   : > { %v593_v33 = vmul.f32 %v3412_v40, %v2573_v63  ;;  %v589_v47 = vadd.f32 %v587_v56, %v577_v61  ;;  %v2597_v0 = vmul.f32 %v2100_v31, %v347_v48  ;;  %v2600_v18 = vmul.f32 %v2112_v37, %v348_v1  ;;  %v409_v56 = vpop.permute.xlu1 %408 }
 0x126   : > { %v484_v10 = vadd.f32 %v482_v23, %v472_v54  ;;  %v656_v3 = vadd.f32 %v654_v39, %v2422_v57  ;;  %v485_v11 = vadd.f32 %v483_v6, %v473_v5  ;;  %v594_v50 = vadd.f32 %v592_v62, %v582_v2 }
 0x127   : > { %v3415_v24 = vstv %s3407_s1  ;;  %v3416_v40 = vstv %s3409_s16  ;;  %v3417_v61 = vstv %s3413_s19  ;;  %v3420_v54 = vstv %s3414_s23  ;;  %s3424_s19 = sld [smem:[#allocation62_spill]]  ;;  %s3429_s23 = sld [smem:[#allocation67_spill]] }
 0x128   : > { %v666_v41 = vmul.f32 %v3415_v24, %v2482_v4  ;;  %v684_v51 = vmul.f32 %v3416_v40, %v2476_v34  ;;  %v488_v22 = vmul.f32 %v3417_v61, %v2597_v0  ;;  %v3418_v36 = vmov %v3417_v61 }
 0x129   : > { %v489_v48 = vmul.f32 %v3418_v36, %v2600_v18  ;;  %v598_v57 = vmul.f32 %v3420_v54, %v2597_v0  ;;  %v595_v5 = vadd.f32 %v593_v33, %v583_v28  ;;  %v410_v2 = vsel %vm346_vm6, %v407_v58, %v409_v56 }
 0x12a   : > { %v411_v39 = vsel %vm346_vm6, %v409_v56, %v407_v58  ;;  %v3423_v23 = vmov %v3420_v54  ;;  %v668_v62 = vadd.f32 %v666_v41, %v656_v3  ;;  %v2626_v1 = vmul.f32 %v410_v2, %v2100_v31 }
 0x12b   : > { %v599_v6 = vmul.f32 %v3423_v23, %v2600_v18  ;;  %v2629_v33 = vmul.f32 %v411_v39, %v2112_v37  ;;  %v490_v28 = vadd.f32 %v488_v22, %v478_v44  ;;  %v686_v24 = vadd.f32 %v684_v51, %v2432_v12 }
 0x12c   : > { %v491_v40 = vadd.f32 %v489_v48, %v479_v25  ;;  %v600_v58 = vadd.f32 %v598_v57, %v588_v20  ;;  %v680_v56 = vadd.f32 %v2134_v8, %v668_v62  ;;  %v3427_v61 = vstv %s3419_s13 }
 0x12d   : > { %v690_v3 = vmul.f32 %v3427_v61, %v2512_v29  ;;  %v3428_v41 = vstv %s3421_s26  ;;  %v3431_v44 = vstv %s3422_s28  ;;  %v3433_v8 = vstv %s3424_s19  ;;  %s2659_s26 = sld [smem:[#allocation3 + $0x19]]  ;;  %s3439_s28 = sld [smem:[#allocation66_spill]] }
 0x12e   : > { %v494_v31 = vmul.f32 %v3428_v41, %v2626_v1  ;;  %v3430_v36 = vmov %v3428_v41  ;;  %v604_v12 = vmul.f32 %v3431_v44, %v2626_v1  ;;  %v3432_v51 = vmov %v3431_v44 }
 0x12f   : > { %v495_v37 = vmul.f32 %v3430_v36, %v2629_v33  ;;  %v605_v25 = vmul.f32 %v3432_v51, %v2629_v33  ;;  %v692_v20 = vadd.f32 %v690_v3, %v680_v56  ;;  %v696_v22 = vmul.f32 %v3433_v8, %v2538_v14 }
 0x130   : > { %v3434_v48 = vstv %s3425_s29  ;;  %v3435_v57 = vstv %s3426_s17  ;;  %v496_v39 = vadd.f32 %v494_v31, %v484_v10  ;;  %v606_v62 = vadd.f32 %v604_v12, %v594_v50 }
 0x131   : > { %v702_v54 = vmul.f32 %v3434_v48, %v2570_v19  ;;  %v708_v2 = vmul.f32 %v3435_v57, %v2597_v0  ;;  %v497_v23 = vadd.f32 %v495_v37, %v485_v11  ;;  %v607_v61 = vadd.f32 %v605_v25, %v595_v5 }
 0x132   : > { %v698_v41 = vadd.f32 %v696_v22, %v686_v24  ;;  %v3436_v56 = vstv %s3429_s23  ;;  %v3437_v44 = vstv %s3399_s27  ;;  %v498_v8 = vadd.f32 %v496_v39, %v490_v28  ;;  %s3440_s27 = sld [smem:[#allocation70_spill]] }
 0x133   : > { %v704_v36 = vadd.f32 %v702_v54, %v692_v20  ;;  %v714_v3 = vmul.f32 %v3436_v56, %v2626_v1  ;;  %v655_v51 = vmul.f32 %v3437_v44, %v2428_v16  ;;  %v499_v48 = vadd.f32 %v497_v23, %v491_v40 }
 0x134   : > { %v608_v10 = vadd.f32 %v606_v62, %v600_v58  ;;  %v601_v11 = vadd.f32 %v599_v6, %v589_v47  ;;  %v710_v50 = vadd.f32 %v708_v2, %v698_v41  ;;  %v3438_v31 = vstv %s3407_s1  ;;  %500 = vrot.lane.b32.xlu0 %v498_v8, %s1648_s21  ;;  %s3450_s1 = sld [smem:[#allocation75_spill]] }
 0x135   : > { %v716_v5 = vadd.f32 %v714_v3, %v704_v36  ;;  %v657_v24 = vadd.f32 %v655_v51, %v2437_v35  ;;  %v667_v37 = vmul.f32 %v3438_v31, %v2485_v13  ;;  %502 = vrot.lane.b32.xlu1 %v499_v48, %s1648_s21  ;;  %v675_v40 = vadd.f32 %v2123_v49, %v2439_v15  ;;  %s3448_s21 = sld [smem:[#allocation74_spill]] }
 0x136   : > { %v609_v28 = vadd.f32 %v607_v61, %v601_v11  ;;  %v3442_v47 = vstv %s3409_s16  ;;  %v775_v58 = vstv %s2632_s22  ;;  %v3443_v25 = vstv %s3419_s13  ;;  %s3464_s16 = sld [smem:[#allocation71_spill]]  ;;  %s2870_s13 = sld [smem:[#allocation3 + $0x1b]] }
 0x137   : > { %v685_v6 = vmul.f32 %v3442_v47, %v2479_v46  ;;  %v718_v12 = vadd.f32 %v716_v5, %v710_v50  ;;  %v669_v35 = vadd.f32 %v667_v37, %v657_v24  ;;  %v691_v20 = vmul.f32 %v3443_v25, %v2515_v30  ;;  %s3563_s22 = sld [smem:[#allocation18_spill]] }
 0x138   : > { %v3444_v22 = vstv %s3424_s19  ;;  %v3445_v2 = vstv %s3425_s29  ;;  %v3446_v49 = vstv %s3426_s17  ;;  %v3447_v23 = vstv %s3439_s28  ;;  %s1649_s17 = smov 32   ;;  %s1650_s29 = smov 16  }
 0x139   : > { %v697_v54 = vmul.f32 %v3444_v22, %v2541_v45  ;;  %v687_v57 = vadd.f32 %v685_v6, %v675_v40  ;;  %v703_v39 = vmul.f32 %v3445_v2, %v2573_v63  ;;  %v709_v15 = vmul.f32 %v3446_v49, %v2600_v18  ;;  %610 = vrot.lane.b32.xlu0 %v608_v10, %s1649_s17  ;;  %s3523_s19 = sld [smem:[#allocation88_spill]]  ;;  %s2886_s28 = sld [smem:[#allocation3 + $0x4c]] }
 0x13a   : > { %v867_v62 = vmul.f32 %v3447_v23, %v2425_v9  ;;  %v681_v61 = vadd.f32 %v2169_v7, %v669_v35  ;;  %v875_v41 = vadd.f32 %v2451_v32, %v2446_v43  ;;  %v3449_v36 = vstv %s3440_s27  ;;  %612 = vrot.lane.b32.xlu1 %v609_v28, %s1649_s17  ;;  %s1653_s27 = smov 80  }
 0x13b   : > { %v879_v56 = vmul.f32 %v3449_v36, %v2482_v4  ;;  %v3451_v3 = vstv %s3441_s3  ;;  %v699_v51 = vadd.f32 %v697_v54, %v687_v57  ;;  %v3452_v8 = vstv %s3429_s23  ;;  %s3468_s3 = sld [smem:[#allocation73_spill]]  ;;  %s3526_s23 = sld [smem:[#allocation86_spill]] }
 0x13c   : > { %v897_v44 = vmul.f32 %v3451_v3, %v2476_v34  ;;  %v715_v48 = vmul.f32 %v3452_v8, %v2629_v33  ;;  %v869_v7 = vadd.f32 %v867_v62, %v2444_v17  ;;  %v793_v11 = vstv %s2659_s26  ;;  %s3564_s26 = sld [smem:[#allocation23_spill]] }
 0x13d   : > { %v693_v43 = vadd.f32 %v691_v20, %v681_v61  ;;  %v887_v32 = vadd.f32 %v2153_v38, %v875_v41  ;;  %v3453_v50 = vstv %s2051_s12  ;;  %v3454_v10 = vstv %s3448_s21  ;;  %720 = vrot.lane.b32.xlu0 %v718_v12, %s1650_s29  ;;  %s3497_s12 = sld [smem:[#allocation79_spill]]  ;;  %s3565_s21 = sld [smem:[#allocation24_spill]] }
 0x13e   : > { %v903_v5 = vmul.f32 %v3453_v50, %v2512_v29  ;;  %v909_v24 = vmul.f32 %v3454_v10, %v2538_v14  ;;  %v711_v31 = vadd.f32 %v709_v15, %v699_v51  ;;  %v881_v37 = vadd.f32 %v879_v56, %v869_v7  ;;  %s1412_s17 = sshll.u32 %s3563_s22, 7 }
 0x13f   : > { %v3455_v28 = vstv %s3450_s1  ;;  %v3456_v40 = vstv %s3304_s10  ;;  %v705_v6 = vadd.f32 %v703_v39, %v693_v43  ;;  %v899_v35 = vadd.f32 %v897_v44, %v887_v32  ;;  %s2851_s10 = sld [smem:[#allocation3 + $0x4a]] }
 0x140   : > { %v915_v17 = vmul.f32 %v3455_v28, %v2570_v19  ;;  %v921_v47 = vmul.f32 %v3456_v40, %v2597_v0  ;;  %v3457_v38 = vstv %s3362_s14  ;;  %v864_v20 = vadd.f32 %v2352_v60, %v2490_v53  ;;  %s3462_s14 = sld [smem:[#allocation68_spill]] }
 0x141   : > { %v856_v25 = vmul.f32 %v3457_v38, %v2390_v55  ;;  %v893_v22 = vadd.f32 %v2189_v52, %v881_v37  ;;  %v3458_v54 = vmov %v3447_v23  ;;  %v3459_v2 = vstv %s3365_s4  ;;  %s3469_s4 = sld [smem:[#allocation81_spill]] }
 0x142   : > { %v868_v57 = vmul.f32 %v3458_v54, %v2428_v16  ;;  %v874_v39 = vmul.f32 %v3459_v2, %v2318_v59  ;;  %v3460_v49 = vmov %v3449_v36  ;;  %v717_v23 = vadd.f32 %v715_v48, %v705_v6 }
 0x143   : > { %v880_v15 = vmul.f32 %v3460_v49, %v2485_v13  ;;  %v911_v62 = vadd.f32 %v909_v24, %v899_v35  ;;  %v3461_v60 = vstv %s3306_s20  ;;  %v3463_v12 = vmov %v3451_v3  ;;  %v3478_v49 = vld [vmem:[#allocation103_spill] sm:$0xff]  ;;  %s1651_s20 = smov 112  }
 0x144   : > { %v927_v53 = vmul.f32 %v3461_v60, %v2626_v1  ;;  %v898_v52 = vmul.f32 %v3463_v12, %v2479_v46  ;;  %v905_v61 = vadd.f32 %v903_v5, %v893_v22  ;;  %v870_v41 = vadd.f32 %v868_v57, %v856_v25  ;;  %v3476_v25 = vld [vmem:[#allocation83_spill] sm:$0xff] }
 0x145   : > { %v876_v36 = vadd.f32 %v874_v39, %v864_v20  ;;  %v3465_v56 = vmov %v3453_v50  ;;  %v719_v44 = vadd.f32 %v717_v23, %v711_v31  ;;  %v923_v51 = vadd.f32 %v921_v47, %v911_v62  ;;  %v3473_v47 = vld [vmem:[#allocation98_spill] sm:$0xff] }
 0x146   : > { %v904_v3 = vmul.f32 %v3465_v56, %v2515_v30  ;;  %v3466_v8 = vmov %v3454_v10  ;;  %v3467_v7 = vmov %v3455_v28  ;;  %v917_v32 = vadd.f32 %v915_v17, %v905_v61 }
 0x147   : > { %v910_v48 = vmul.f32 %v3466_v8, %v2541_v45  ;;  %v916_v43 = vmul.f32 %v3467_v7, %v2573_v63  ;;  %v882_v50 = vadd.f32 %v880_v15, %v870_v41  ;;  %v888_v5 = vadd.f32 %v2172_v27, %v876_v36  ;;  %722 = vrot.lane.b32.xlu1 %v719_v44, %s1650_s29  ;;  %s3567_s29 = sshll.u32 %s3564_s26, 3 }
 0x148   : > { %v3470_v10 = vmov %v3456_v40  ;;  %v3471_v31 = vstv %s3462_s14  ;;  %v3472_v28 = vstv %s3307_s18  ;;  %v3474_v6 = vstv %s3464_s16 }
 0x149   : > { %v922_v24 = vmul.f32 %v3470_v10, %v2600_v18  ;;  %v959_v37 = vmul.f32 %v3471_v31, %v2321_v26  ;;  %v965_v40 = vmul.f32 %v3472_v28, %v2387_v21  ;;  %v971_v35 = vmul.f32 %v3474_v6, %v3473_v47  ;;  %v3486_v31 = vld [vmem:[#allocation84_spill] sm:$0xff]  ;;  %v3487_v28 = vld [vmem:[#allocation90_spill] sm:$0xff] }
 0x14a   : > { %v3475_v17 = vstv %s2107_s24  ;;  %v929_v27 = vadd.f32 %v927_v53, %v917_v32  ;;  %v894_v20 = vadd.f32 %v3476_v25, %v882_v50  ;;  %v900_v22 = vadd.f32 %v898_v52, %v888_v5 }
 0x14b   : > { %v977_v38 = vmul.f32 %v3475_v17, %v2425_v9  ;;  %v3477_v54 = vmov %v3461_v60  ;;  %v973_v2 = vadd.f32 %v971_v35, %v959_v37  ;;  %v3479_v15 = vstv %s3468_s3  ;;  %v3489_v17 = vld [vmem:[#allocation104_spill] sm:$0xff] }
 0x14c   : > { %v928_v57 = vmul.f32 %v3477_v54, %v2629_v33  ;;  %v983_v23 = vmul.f32 %v3479_v15, %v3478_v49  ;;  %v3480_v62 = vstv %s3469_s4  ;;  %v931_v12 = vadd.f32 %v929_v27, %v923_v51 }
 0x14d   : > { %v979_v39 = vadd.f32 %v977_v38, %v965_v40  ;;  %v989_v60 = vmul.f32 %v3480_v62, %v2482_v4  ;;  %v906_v61 = vadd.f32 %v904_v3, %v894_v20  ;;  %v912_v53 = vadd.f32 %v910_v48, %v900_v22  ;;  %v3492_v20 = vld [vmem:[#allocation99_spill] sm:$0xff] }
 0x14e   : > { %v3481_v52 = vstv %s2127_s30  ;;  %v985_v36 = vadd.f32 %v983_v23, %v973_v2  ;;  %v3482_v44 = vstv %s2129_s2  ;;  %v3483_v7 = vstv %s2137_s11  ;;  %933 = vrot.lane.b32.xlu0 %v931_v12, %s1651_s20 }
 0x14f   : > { %v1007_v41 = vmul.f32 %v3481_v52, %v2476_v34  ;;  %v991_v56 = vadd.f32 %v989_v60, %v979_v39  ;;  %v1013_v8 = vmul.f32 %v3482_v44, %v2512_v29  ;;  %v1019_v32 = vmul.f32 %v3483_v7, %v2538_v14 }
 0x150   : > { %v918_v3 = vadd.f32 %v916_v43, %v906_v61  ;;  %v924_v51 = vadd.f32 %v922_v24, %v912_v53  ;;  %v3484_v48 = vstv %s2139_s0  ;;  %v3485_v5 = vstv %s2145_s5 }
 0x151   : > { %v1025_v50 = vmul.f32 %v3484_v48, %v2570_v19  ;;  %v1031_v10 = vmul.f32 %v3485_v5, %v2597_v0  ;;  %v997_v37 = vadd.f32 %v3486_v31, %v985_v36  ;;  %v1003_v40 = vadd.f32 %v3487_v28, %v991_v56 }
 0x152   : > { %v3488_v6 = vstv %s2147_s15  ;;  %v3490_v38 = vstv %s3462_s14  ;;  %v930_v43 = vadd.f32 %v928_v57, %v918_v3  ;;  %v3491_v24 = vstv %s3307_s18  ;;  %s3499_s18 = sld [smem:[#allocation54_spill]]  ;;  %s179_s14 = scalar_lea.vmem [#allocation9], %s3567_s29 }
 0x153   : > { %v1037_v35 = vmul.f32 %v3488_v6, %v2626_v1  ;;  %v960_v27 = vmul.f32 %v3490_v38, %v3489_v17  ;;  %v966_v25 = vmul.f32 %v3491_v24, %v2390_v55  ;;  %v3493_v22 = vstv %s3464_s16  ;;  %v3506_v24 = vld [vmem:[#allocation87_spill] sm:$0xff]  ;;  %s1218_s16 = sshll.u32 %s179_s14, 4  ;;  %s3015_s16 = int_to_ptr.vmem [resolvable:$true] %s1218_s16 }
 0x154   : > { %v972_v54 = vmul.f32 %v3493_v22, %v3492_v20  ;;  %v3494_v2 = vstv %s2107_s24  ;;  %v1009_v15 = vadd.f32 %v1007_v41, %v997_v37  ;;  %v1015_v23 = vadd.f32 %v1013_v8, %v1003_v40  ;;  %v3507_v22 = vld [vmem:[#allocation93_spill] sm:$0xff]  ;;  %s2853_s24 = sld [smem:[#allocation3 + $0x1a]] }
 0x155   : > { %v978_v39 = vmul.f32 %v3494_v2, %v2428_v16  ;;  %v3495_v62 = vstv %s3468_s3  ;;  %v3496_v12 = vstv %s3469_s4  ;;  %v932_v57 = vadd.f32 %v930_v43, %v924_v51 }
 0x156   : > { %v984_v60 = vmul.f32 %v3495_v62, %v2318_v59  ;;  %v990_v61 = vmul.f32 %v3496_v12, %v2485_v13  ;;  %v974_v53 = vadd.f32 %v972_v54, %v960_v27  ;;  %v3498_v36 = vstv %s2127_s30  ;;  %s3516_s30 = sld [smem:[#allocation85_spill]] }
 0x157   : > { %v980_v52 = vadd.f32 %v978_v39, %v966_v25  ;;  %v1008_v56 = vmul.f32 %v3498_v36, %v2479_v46  ;;  %v1021_v44 = vadd.f32 %v1019_v32, %v1009_v15  ;;  %v1027_v41 = vadd.f32 %v1025_v50, %v1015_v23  ;;  %935 = vrot.lane.b32.xlu1 %v932_v57, %s1651_s20  ;;  %s3568_s20 = sld [smem:[#allocation107_spill]] }
 0x158   : > { %v3500_v8 = vstv %s2129_s2  ;;  %v3501_v3 = vstv %s2137_s11  ;;  %v986_v51 = vadd.f32 %v984_v60, %v974_v53  ;;  %v3502_v31 = vstv %s2139_s0  ;;  %s3509_s2 = sld [smem:[#allocation77_spill]]  ;;  %s3511_s0 = sld [smem:[#allocation78_spill]] }
 0x159   : > { %v1014_v7 = vmul.f32 %v3500_v8, %v2515_v30  ;;  %v1020_v48 = vmul.f32 %v3501_v3, %v2541_v45  ;;  %v992_v5 = vadd.f32 %v990_v61, %v980_v52  ;;  %v1026_v37 = vmul.f32 %v3502_v31, %v2573_v63  ;;  %s3512_s11 = sld [smem:[#allocation80_spill]] }
 0x15a   : > { %v3503_v28 = vstv %s2145_s5  ;;  %v1033_v40 = vadd.f32 %v1031_v10, %v1021_v44  ;;  %v1039_v50 = vadd.f32 %v1037_v35, %v1027_v41  ;;  %v3504_v6 = vstv %s3497_s12  ;;  %s2868_s5 = sld [smem:[#allocation3 + $0x4b]] }
 0x15b   : > { %v1032_v32 = vmul.f32 %v3503_v28, %v2600_v18  ;;  %v1069_v38 = vmul.f32 %v3504_v6, %v2321_v26  ;;  %v3505_v27 = vstv %s2155_s25  ;;  %v998_v25 = vadd.f32 %v3506_v24, %v986_v51 }
 0x15c   : > { %v1075_v43 = vmul.f32 %v3505_v27, %v2387_v21  ;;  %v1004_v54 = vadd.f32 %v3507_v22, %v992_v5  ;;  %v3508_v2 = vstv %s3499_s18  ;;  %v3510_v15 = vstv %s2175_s9  ;;  %s1204_s18 = scalar_lea.sflag [#allocation6], %s3564_s26 }
 0x15d   : > { %v1081_v39 = vmul.f32 %v3508_v2, %v3473_v47  ;;  %v1087_v10 = vmul.f32 %v3510_v15, %v2425_v9  ;;  %v1041_v35 = vadd.f32 %v1039_v50, %v1033_v40  ;;  %v3513_v23 = vstv %s2147_s15  ;;  %s1652_s15 = smov 96  }
 0x15e   : > { %v1038_v62 = vmul.f32 %v3513_v23, %v2629_v33  ;;  %v3514_v60 = vstv %s3313_s8  ;;  %v3515_v61 = vstv %s2184_s7  ;;  %v1010_v53 = vadd.f32 %v1008_v56, %v998_v25 }
 0x15f   : > { %v1093_v12 = vmul.f32 %v3514_v60, %v3478_v49  ;;  %v1099_v57 = vmul.f32 %v3515_v61, %v2482_v4  ;;  %v1016_v52 = vadd.f32 %v1014_v7, %v1004_v54  ;;  %v1083_v36 = vadd.f32 %v1081_v39, %v1069_v38  ;;  %1043 = vrot.lane.b32.xlu0 %v1041_v35, %s1652_s15  ;;  %v3527_v39 = vld [vmem:[#allocation94_spill] sm:$0xff] }
 0x160   : > { %v1089_v44 = vadd.f32 %v1087_v10, %v1075_v43  ;;  %v3517_v41 = vstv %s2186_s6  ;;  %v3518_v3 = vstv %s3509_s2  ;;  %v3519_v7 = vstv %s3511_s0  ;;  %v3528_v10 = vld [vmem:[#allocation96_spill] sm:$0xff] }
 0x161   : > { %v1117_v8 = vmul.f32 %v3517_v41, %v2476_v34  ;;  %v1123_v56 = vmul.f32 %v3518_v3, %v2512_v29  ;;  %v1129_v51 = vmul.f32 %v3519_v7, %v2538_v14  ;;  %v3520_v5 = vstv %s3512_s11 }
 0x162   : > { %v1135_v31 = vmul.f32 %v3520_v5, %v2570_v19  ;;  %v1022_v28 = vadd.f32 %v1020_v48, %v1010_v53  ;;  %v1028_v40 = vadd.f32 %v1026_v37, %v1016_v52  ;;  %v1095_v50 = vadd.f32 %v1093_v12, %v1083_v36 }
 0x163   : > { %v1101_v6 = vadd.f32 %v1099_v57, %v1089_v44  ;;  %v3521_v38 = vstv %s3516_s30  ;;  %v3522_v43 = vstv %s3497_s12  ;;  %v3524_v25 = vstv %s2155_s25  ;;  %s3536_s25 = sld [smem:[#allocation82_spill]]  ;;  %s3013_s12 = scalar_lea.hbm %s3568_s20, %s1412_s17 }
 0x164   : > { %v1141_v27 = vmul.f32 %v3521_v38, %v2597_v0  ;;  %v1070_v24 = vmul.f32 %v3522_v43, %v3489_v17  ;;  %v1076_v48 = vmul.f32 %v3524_v25, %v2390_v55  ;;  %v3525_v37 = vmov %v3508_v2  ;;  %v3537_v25 = vld [vmem:[#allocation95_spill] sm:$0xff] }
 0x165   : > { %v1082_v22 = vmul.f32 %v3525_v37, %v3492_v20  ;;  %v1034_v54 = vadd.f32 %v1032_v32, %v1022_v28  ;;  %v1040_v2 = vadd.f32 %v1038_v62, %v1028_v40  ;;  %v1107_v15 = vadd.f32 %v3527_v39, %v1095_v50  ;;  %v3534_v40 = vld [vmem:[#allocation69_spill] sm:$0xff] }
 0x166   : > { %v1113_v35 = vadd.f32 %v3528_v10, %v1101_v6  ;;  %v3529_v60 = vstv %s2175_s9  ;;  %v3530_v61 = vstv %s3313_s8  ;;  %v3531_v53 = vstv %s2184_s7  ;;  %v3541_v10 = vld [vmem:[#allocation97_spill] sm:$0xff]  ;;  %s3542_s7 = sld [smem:[#allocation76_spill]]  ;;  %s3544_s9 = sld [smem:[#allocation92_spill]] }
 0x167   : > { %v1084_v23 = vadd.f32 %v1082_v22, %v1070_v24  ;;  %v1088_v12 = vmul.f32 %v3529_v60, %v2428_v16  ;;  %v1094_v57 = vmul.f32 %v3530_v61, %v2318_v59  ;;  %v1100_v32 = vmul.f32 %v3531_v53, %v2485_v13  ;;  %s3548_s8 = sld [smem:[#allocation89_spill]] }
 0x168   : > { %v1042_v62 = vadd.f32 %v1040_v2, %v1034_v54  ;;  %v1119_v52 = vadd.f32 %v1117_v8, %v1107_v15  ;;  %v1125_v36 = vadd.f32 %v1123_v56, %v1113_v35  ;;  %v3532_v44 = vstv %s3523_s19 }
 0x169   : > { %v1147_v41 = vmul.f32 %v3532_v44, %v2626_v1  ;;  %v1090_v3 = vadd.f32 %v1088_v12, %v1076_v48  ;;  %v1096_v7 = vadd.f32 %v1094_v57, %v1084_v23  ;;  %v3533_v5 = vstv %s2186_s6  ;;  %s3540_s6 = sld [smem:[#allocation91_spill]] }
 0x16a   : > { %v1118_v28 = vmul.f32 %v3533_v5, %v2479_v46  ;;  %v3535_v50 = vstv %s3526_s23  ;;  %1045 = vrot.lane.b32.xlu1 %v1042_v62, %s1652_s15  ;;  %v1131_v38 = vadd.f32 %v1129_v51, %v1119_v52  ;;  %v1137_v8 = vadd.f32 %v1135_v31, %v1125_v36 }
 0x16b   : > { %v789_v6 = vmul.f32 %v3535_v50, %v3534_v40  ;;  %v799_v56 = vstv %s2851_s10  ;;  %v805_v43 = vstv %s2853_s24  ;;  %v1102_v24 = vadd.f32 %v1100_v32, %v1090_v3 }
 0x16c   : > { %v1108_v48 = vadd.f32 %v3537_v25, %v1096_v7  ;;  %v3538_v37 = vstv %s3509_s2  ;;  %v3539_v54 = vstv %s3511_s0  ;;  %v1143_v39 = vadd.f32 %v1141_v27, %v1131_v38  ;;  %s1563_s2 = scalar_lea.vmem %s3015_s16, 128  ;;  %s1654_s0 = smov [#allocation9]  }
 0x16d   : > { %v1124_v22 = vmul.f32 %v3538_v37, %v2515_v30  ;;  %v1130_v2 = vmul.f32 %v3539_v54, %v2541_v45  ;;  %v1149_v15 = vadd.f32 %v1147_v41, %v1137_v8  ;;  %v811_v51 = vstv %s2868_s5  ;;  %p1564_p7 = scmp.ne.s32.totalorder %s3015_s16, %s1563_s2 }
 0x16e   : > { %v817_v31 = vstv %s2870_s13  ;;  %v1114_v35 = vadd.f32 %v3541_v10, %v1102_v24  ;;  %v1120_v23 = vadd.f32 %v1118_v28, %v1108_v48  ;;  %v3543_v60 = vstv %s3512_s11  ;;  %s1567_s11 = sshll.u32 %s1654_s0, 4  ;;  %s1568_s11 = int_to_ptr.vmem [resolvable:$false] %s1567_s11 }
 0x16f   : > { %v1136_v12 = vmul.f32 %v3543_v60, %v2573_v63  ;;  %v3545_v61 = vstv %s3516_s30  ;;  %v1151_v53 = vadd.f32 %v1149_v15, %v1143_v39  ;;  %v3546_v32 = vmov %v3532_v44  ;;  %p1565_p9 = pnand %p1564_p7, %p1778_p1  ;;  %s1569_s30 = scalar_lea.vmem %s1568_s11, 256 }
 0x170   : > { %v1142_v57 = vmul.f32 %v3545_v61, %v2600_v18  ;;  %v1148_v27 = vmul.f32 %v3546_v32, %v2629_v33  ;;  %v3547_v62 = vstv %s3536_s25  ;;  %v823_v36 = vstv %s2886_s28  ;;  %v3558_v32 = vld [vmem:[#allocation100_spill] sm:$0xff]  ;;  %p1570_p13 = scmp.lt.s32.totalorder %s3015_s16, %s1568_s11  ;;  %p1571_p2 = scmp.lt.s32.totalorder %s1569_s30, %s1563_s2 }
 0x171   : > { %v746_v52 = vmul.f32 %v3547_v62, %v2321_v26  ;;  %v1126_v44 = vadd.f32 %v1124_v22, %v1114_v35  ;;  %v1132_v41 = vadd.f32 %v1130_v2, %v1120_v23  ;;  %v3549_v3 = vmov %v3547_v62  ;;  %1153 = vrot.lane.b32.xlu0 %v1151_v53, %s1653_s27  ;;  %v3559_v62 = vld [vmem:[#allocation101_spill] sm:$0xff]  ;;  %p1566_p11 = pneg %p1565_p9 }
 0x172   : > { %v747_v7 = vmul.f32 %v3549_v3, %v3489_v17  ;;  %v3550_v5 = vstv %s3540_s6  ;;  %v3552_v38 = vstv %s3542_s7  ;;  %v3554_v25 = vstv %s3544_s9  ;;  %p1572_p6 = por %p1571_p2, %p1570_p13 }
 0x173   : > { %v752_v28 = vmul.f32 %v3550_v5, %v2387_v21  ;;  %v3551_v40 = vmov %v3550_v5  ;;  %v758_v26 = vmul.f32 %v3552_v38, %v3473_v47  ;;  %v3553_v8 = vmov %v3552_v38 }
 0x174   : > { %v753_v50 = vmul.f32 %v3551_v40, %v2390_v55  ;;  %v759_v24 = vmul.f32 %v3553_v8, %v3492_v20  ;;  %v764_v17 = vmul.f32 %v3554_v25, %v2425_v9  ;;  %v1138_v48 = vadd.f32 %v1136_v12, %v1126_v44  ;;  %p1573_p10 = pnand %p1572_p6, %p1566_p11 }
 0x175   : > { %v1144_v21 = vadd.f32 %v1142_v57, %v1132_v41  ;;  %v3555_v37 = vmov %v3554_v25  ;;  %v3556_v54 = vstv %s3548_s8  ;;  %v760_v55 = vadd.f32 %v758_v26, %v746_v52 }
 0x176   : > { %v765_v22 = vmul.f32 %v3555_v37, %v2428_v16  ;;  %v770_v2 = vmul.f32 %v3556_v54, %v3478_v49  ;;  %v761_v39 = vadd.f32 %v759_v24, %v747_v7  ;;  %v766_v15 = vadd.f32 %v764_v17, %v752_v28  ;;  %v618_v17 = vld [vmem:[#allocation7 + $0x10] ss:$8 sm:$0x3] }
 0x177   : > { %v3557_v47 = vmov %v3556_v54  ;;  %v1150_v20 = vadd.f32 %v1148_v27, %v1138_v48  ;;  %v776_v9 = vmul.f32 %v775_v58, %v2482_v4  ;;  %v777_v23 = vmul.f32 %v775_v58, %v2485_v13  ;;  %v3560_v58 = vld [vmem:[#allocation102_spill] sm:$0xff] }
 0x178   : > { %v771_v10 = vmul.f32 %v3557_v47, %v2318_v59  ;;  %v767_v35 = vadd.f32 %v765_v22, %v753_v50  ;;  %v772_v60 = vadd.f32 %v770_v2, %v760_v55  ;;  %v794_v16 = vmul.f32 %v793_v11, %v2476_v34 }
 0x179   : > { %v795_v49 = vmul.f32 %v793_v11, %v2479_v46  ;;  %v1152_v61 = vadd.f32 %v1150_v20, %v1144_v21  ;;  %v778_v57 = vadd.f32 %v776_v9, %v766_v15  ;;  %v800_v59 = vmul.f32 %v799_v56, %v2512_v29  ;;  %v3562_v21 = vld [vmem:[#allocation48_spill] sm:$0xff] }
 0x17a   : > { %v773_v12 = vadd.f32 %v771_v10, %v761_v39  ;;  %v779_v53 = vadd.f32 %v777_v23, %v767_v35  ;;  %v784_v27 = vadd.f32 %v3558_v32, %v772_v60  ;;  %v801_v52 = vmul.f32 %v799_v56, %v2515_v30 }
 0x17b   : > { %v806_v13 = vmul.f32 %v805_v43, %v2538_v14  ;;  %1155 = vrot.lane.b32.xlu1 %v1152_v61, %s1653_s27  ;;  %v790_v44 = vadd.f32 %v3560_v58, %v778_v57  ;;  %v807_v41 = vmul.f32 %v805_v43, %v2541_v45  ;;  %v812_v46 = vmul.f32 %v811_v51, %v2570_v19 }
 0x17c   : > { %v785_v4 = vadd.f32 %v3559_v62, %v773_v12  ;;  %v791_v34 = vadd.f32 %v789_v6, %v779_v53  ;;  %v796_v11 = vadd.f32 %v794_v16, %v784_v27  ;;  %v813_v29 = vmul.f32 %v811_v51, %v2573_v63  ;;  %v831_v12 = vld [vmem:[#allocation7 + $0x12] ss:$8 sm:$0x3] }
 0x17d   : > { %v818_v7 = vmul.f32 %v817_v31, %v2597_v0  ;;  %v802_v5 = vadd.f32 %v800_v59, %v790_v44  ;;  %v819_v30 = vmul.f32 %v817_v31, %v2600_v18  ;;  %v824_v14 = vmul.f32 %v823_v36, %v2626_v1  ;;  %v728_v31 = vld [vmem:[#allocation7 + $0x11] ss:$8 sm:$0x3]  ;;  %v941_v59 = vld [vmem:[#allocation7 + $0x13] ss:$8 sm:$0x3] }
 0x17e   : > { %v797_v3 = vadd.f32 %v795_v49, %v785_v4  ;;  %v803_v28 = vadd.f32 %v801_v52, %v791_v34  ;;  %v825_v56 = vmul.f32 %v823_v36, %v2629_v33  ;;  %v808_v40 = vadd.f32 %v806_v13, %v796_v11  ;;  %v508_v33 = vld [vmem:[#allocation7 + $0x7] ss:$8 sm:$0x3]  ;;  %v3561_v36 = vld [vmem:[#allocation47_spill] sm:$0xff] }
 0x17f   : > { %v814_v50 = vadd.f32 %v812_v46, %v802_v5  ;;  %v623_v48 = vrot.slane %v618_v17, %v3561_v36  ;;  %v627_v37 = vrot.slane %v618_v17, %v3562_v21  ;;  %v513_v2 = vrot.slane %v508_v33, %v3561_v36  ;;  %v1051_v13 = vld [vmem:[#allocation7 + $0x14] ss:$8 sm:$0x3] }
 0x180   : > { %v809_v6 = vadd.f32 %v807_v41, %v797_v3  ;;  %v815_v45 = vadd.f32 %v813_v29, %v803_v28  ;;  %v820_v43 = vadd.f32 %v818_v7, %v808_v40  ;;  %v517_v55 = vrot.slane %v508_v33, %v3562_v21 }
 0x181   : > { %v826_v38 = vadd.f32 %v824_v14, %v814_v50  ;;  %v733_v39 = vrot.slane %v728_v31, %v3561_v36  ;;  %v737_v15 = vrot.slane %v728_v31, %v3562_v21  ;;  %v836_v32 = vrot.slane %v831_v12, %v3561_v36 }
 0x182   : > { %v821_v19 = vadd.f32 %v819_v30, %v809_v6  ;;  %v827_v26 = vadd.f32 %v825_v56, %v815_v45  ;;  %v840_v4 = vrot.slane %v831_v12, %v3562_v21  ;;  %v946_v52 = vrot.slane %v941_v59, %v3561_v36  ;;  %v1161_v56 = vld [vmem:[#allocation7 + $0x15] ss:$8 sm:$0x3] }
 0x183   : > { %v828_v8 = vadd.f32 %v826_v38, %v820_v43  ;;  %v950_v34 = vrot.slane %v941_v59, %v3562_v21  ;;  %v1056_v5 = vrot.slane %v1051_v13, %v3561_v36  ;;  %v1060_v28 = vrot.slane %v1051_v13, %v3562_v21 }
 0x184   : > { %v829_v63 = vadd.f32 %v827_v26, %v821_v19  ;;  %v1166_v26 = vrot.slane %v1161_v56, %v3561_v36 }
 0x185   : > { %v843_v29 = vmul.f32 %v836_v32, %v828_v8  ;;  %v1170_v8 = vrot.slane %v1161_v56, %v3562_v21 }
 0x186   : > { %v844_v7 = vmul.f32 %v840_v4, %v829_v63 }
 0x1a6   : > { %v501_v51 = vpop.permute.xlu0 %500 }
 0x1a7   : > { %v503_v0 = vpop.permute.xlu1 %502 }
 0x1a8   : > { %v505_v47 = vsel %vm504_vm8, %v501_v51, %v503_v0  ;;  %v506_v10 = vsel %vm504_vm8, %v503_v0, %v501_v51 }
 0x1a9   : > { %v520_v49 = vmul.f32 %v513_v2, %v506_v10  ;;  %v521_v61 = vmul.f32 %v517_v55, %v505_v47 }
 0x1ab   : > { %v611_v24 = vpop.permute.xlu0 %610 }
 0x1ac   : > { %v613_v25 = vpop.permute.xlu1 %612 }
 0x1ad   : > { %v615_v22 = vsel %vm614_vm7, %v611_v24, %v613_v25  ;;  %v616_v54 = vsel %vm614_vm7, %v613_v25, %v611_v24 }
 0x1ae   : > { %v630_v9 = vmul.f32 %v623_v48, %v616_v54  ;;  %v631_v23 = vmul.f32 %v627_v37, %v615_v22 }
 0x1af   : > { %v721_v18 = vpop.permute.xlu0 %720 }
 0x1b0   : > { %v632_v27 = vadd.f32 %v630_v9, %v520_v49  ;;  %v633_v62 = vadd.f32 %v631_v23, %v521_v61  ;;  %v1494_v9 = vld [vmem:[%s3565_s21] sm:$0xff] }
 0x1b9   : > { %v723_v1 = vpop.permute.xlu1 %722 }
 0x1ba   : > { %v725_v20 = vsel %vm724_vm9, %v721_v18, %v723_v1  ;;  %v726_v35 = vsel %vm724_vm9, %v723_v1, %v721_v18 }
 0x1bb   : > { %v740_v57 = vmul.f32 %v733_v39, %v726_v35  ;;  %v741_v53 = vmul.f32 %v737_v15, %v725_v20 }
 0x1bd   : > { %v742_v58 = vadd.f32 %v740_v57, %v632_v27  ;;  %v743_v44 = vadd.f32 %v741_v53, %v633_v62 }
 0x1bf   : > { %v845_v40 = vadd.f32 %v843_v29, %v742_v58  ;;  %v846_v6 = vadd.f32 %v844_v7, %v743_v44 }
 0x1c0   : > { %v934_v60 = vpop.permute.xlu0 %933 }
 0x1c9   : > { %v936_v16 = vpop.permute.xlu1 %935 }
 0x1ca   : > { %v938_v11 = vsel %vm937_vm10, %v934_v60, %v936_v16  ;;  %v939_v3 = vsel %vm937_vm10, %v936_v16, %v934_v60 }
 0x1cb   : > { %v953_v50 = vmul.f32 %v946_v52, %v938_v11  ;;  %v954_v45 = vmul.f32 %v950_v34, %v939_v3 }
 0x1cd   : > { %v955_v63 = vadd.f32 %v953_v50, %v845_v40  ;;  %v956_v51 = vadd.f32 %v954_v45, %v846_v6 }
 0x1d1   : > { %v1044_v41 = vpop.permute.xlu0 %1043 }
 0x1dc   : > { %v1046_v46 = vpop.permute.xlu1 %1045 }
 0x1dd   : > { %v1048_v30 = vsel %vm1047_vm11, %v1044_v41, %v1046_v46  ;;  %v1049_v14 = vsel %vm1047_vm11, %v1046_v46, %v1044_v41 }
 0x1de   : > { %v1063_v43 = vmul.f32 %v1056_v5, %v1048_v30  ;;  %v1064_v19 = vmul.f32 %v1060_v28, %v1049_v14 }
 0x1e0   : > { %v1065_v17 = vadd.f32 %v1063_v43, %v955_v63  ;;  %v1066_v18 = vadd.f32 %v1064_v19, %v956_v51 }
 0x1e3   : > { %v1154_v38 = vpop.permute.xlu0 %1153 }
 0x1ed   : > { %v1156_v0 = vpop.permute.xlu1 %1155 }
 0x1ee   : > { %v1158_v24 = vsel %vm1157_vm12, %v1154_v38, %v1156_v0  ;;  %v1159_v25 = vsel %vm1157_vm12, %v1156_v0, %v1154_v38 }
 0x1ef   : > { %v1173_v1 = vmul.f32 %v1166_v26, %v1158_v24  ;;  %v1174_v33 = vmul.f32 %v1170_v8, %v1159_v25 }
 0x1f1   : > { %v1175_v31 = vadd.f32 %v1173_v1, %v1065_v17  ;;  %v1176_v48 = vadd.f32 %v1174_v33, %v1066_v18 }
 0x1f3   : > { %v1177_v37 = vsub.f32 0.0, %v1175_v31  ;;  %v1178_v42 = vsub.f32 0.0, %v1176_v48 }
 0x1f5   : > { %v1179_v22 = vmul.f32 1.442695, %v1177_v37  ;;  %v1181_v54 = vmul.f32 1.442695, %v1178_v42 }
 0x1f7   : > { %1486 = vpow2.f32 %v1179_v22 }
 0x1f8   : > { %1488 = vpow2.f32 %v1181_v54 }
 0x201   : > { %v1487_v21 = vpop.eup %1486 }
 0x202   : > { %v1489_v2 = vpop.eup %1488  ;;  %v1183_v55 = vadd.f32 1.0, %v1487_v21 }
 0x203   : > { %v1184_v39 = vadd.f32 1.0, %v1489_v2 }
 0x204   : > { %1490 = vrcp.f32 %v1183_v55 }
 0x205   : > { %1492 = vrcp.f32 %v1184_v39 }
 0x20e   : > { %v1491_v15 = vpop.eup %1490 }
 0x20f   : > { %v1493_v47 = vpop.eup %1492  ;;  %v1192_v10 = vrot.slane %v1491_v15, %v3561_v36 }
 0x210   : > { %v1196_v20 = vrot.slane %v1493_v47, %v3561_v36 }
 0x212   : > { %v1199_v35 = vcombine.low %v1192_v10, %v1196_v20 }
 0x214   : > { %v1201_v23 = vmul.f32 %v1494_v9, %v1199_v35 }
 0x216   : > { %1202 = vst [vmem:[%s179_s14] sm:$0xff] %v1201_v23 }
 0x217   : > { %1576 = shalt.err (!%p1573_p10)
}
 0x218   : > { %s1577_s10 = scalar_lea.hbm %s3013_s12, 128  ;;  %s1581_s5 = scalar_lea.hbm %s3568_s20, 256 }
 0x219   : > { %p1578_p12 = scmp.ne.s32.totalorder %s3013_s12, %s1577_s10  ;;  %p1582_p3 = scmp.lt.u32.totalorder %s3013_s12, %s3568_s20 }
 0x21a   : > { %p1583_p0 = scmp.lt.u32.totalorder %s1581_s5, %s1577_s10  ;;  %p1585_p7 = scmp.lt.u32.totalorder %s1577_s10, %s3013_s12 }
 0x21b   : > { %p1579_p5 = pnand %p1578_p12, %p1778_p1 }
 0x21c   : > { %p1584_p4 = por %p1583_p0, %p1582_p3 }
 0x21d   : > { %p1580_p8 = pneg %p1579_p5 }
 0x21e   : > { %p1586_p9 = por %p1585_p7, %p1584_p4 }
 0x220   : > { %p1587_p11 = pnand %p1586_p9, %p1580_p8 }
 0x222   : > { %1590 = shalt.err (!%p1587_p11)
}
 0x223   : > { %1419 = dma.vmem_to_hbm [thread:$0]  (%p1778_p1), %s3015_s16, 128, %s3013_s12, %s1204_s18  }
 0x224 PF: > { %s3569_s23 = sld [smem:[#allocation14_spill]]  ;;  %s3570_s28 = sld [smem:[#allocation19_spill]] }
 0x225   : > { %s3571_s25 = sld [smem:[#allocation17_spill]] }
 0x22a   : > { %s1230_s6 = sand.u32 1, %s3569_s23   ;;  %p3572_p13 = scmp.ne.s32.totalorder %s3570_s28, 0 }
 0x22b   : > { %p3573_p2 = scmp.ge.s32.totalorder %s3571_s25, 2  ;;  %s1231_s7 = scalar_lea.sflag [#allocation6], %s1230_s6 }
 0x22d   : > { %p1430_p6 = pnand %p3573_p2, %p3572_p13 }
 0x22f   : > { %1618 = dma.done.wait (!%p1430_p6), %s1231_s7, 128  }
 0x230   : > { %1620 = vsyncadd (!%p1430_p6), %s1231_s7, 4294967168  ;;  %s3574_s25 = sld [smem:[#allocation20_spill]]  ;;  %s3575_s22 = sld [smem:[#allocation15_spill]] }
 0x231   : > { %s3576_s23 = sld [smem:[#allocation16_spill]]  ;;  %s3577_s24 = sld [smem:[#allocation21_spill]] }
 0x236   : > { %p21_p10 = scmp.ge.s32.totalorder %s3574_s25, 4  }
 0x238   :  { %23 = sbr.rel (!%p21_p10) target bundleno = 19 (0x13), region = 90 }
 0x23f   :  { %1236 = vsyncpa [#allocation5], 1 }
 0x240   :  { %1238 = vsyncpa [#allocation5 + $0x1], 1 }
 0x241   :  { %1239 = vsyncpa [#allocation8], 1 }
 0x242   :  { %1240 = vsyncpa [#allocation6], 1 }
 0x243   :  { %1242 = vsyncpa [#allocation6 + $0x1], 1 }

</bundles_post_ra>
